<compile_context>
chip_gen: v7x
topology: tpu7x:2x2x1
jax: 0.10.0
libtpu: 0.0.40
codegen_flags: <defaults>
</compile_context>

<pallas_src>
import jax
import jax.numpy as jnp
from jax.experimental import pallas as pl
from jax.experimental.pallas import tpu as pltpu

IN_DIM = 28 * 28      # 784, fixed by the module
IN_PAD = 896          # 7 * 128: lane-dense decoder / BCE path
HIDDEN = 500          # module default hidden_dim (logical)
HIDDEN_PAD = 512      # padded to a multiple of 128 for lane-dense vregs
Z_DIM = 20            # module default z_dim
MS_PAD = 256          # fused mu|std head: mu at lane 0, std at lane 128
STABILITY = 1e-6


def _chip_kind():
    return jax.devices()[0].device_kind.lower()


def _use_bf16_eup(kind):
    # bf16 EUP path only on v6e / v7x (v5e and older have no bf16 VPU/EUP).
    return any(t in kind for t in ("v6", "v7", "7x"))


def _two_tensorcores(kind):
    # v7x has 2 TensorCores per chip.
    return any(t in kind for t in ("v7", "7x"))


def _make_vae_kernel(tb, batch_real, need_mask, use_bf16_eup):
    """Kernel for batch-tile size `tb`.  `batch_real` is the true (unpadded)
    batch size; masking is only emitted when `need_mask` (batch was padded)."""

    def vae_kernel(x_ref, eps_ref,
                   w_in_ref, b_in_ref,
                   w_ms_ref, b_ms_ref,
                   w_d1_ref, b_d1_ref,
                   w_d2_ref, b_d2_ref,
                   out_ref):
        x_bf = x_ref[...]                                   # [tb, 896] bf16
        eps = eps_ref[...]                                  # [tb, Z]   f32

        # ---- Encoder ----
        h = jnp.dot(x_bf, w_in_ref[...],
                    preferred_element_type=jnp.float32) + b_in_ref[...]
        h = jnp.maximum(h, 0.0).astype(jnp.bfloat16)        # ReLU, [tb, 512]

        # fused mu/std head: one matmul; mu lives in lanes [0, Z),
        # std in lanes [128, 128+Z) -> both slices start on a vreg boundary.
        ms = jnp.dot(h, w_ms_ref[...],
                     preferred_element_type=jnp.float32) + b_ms_ref[...]
        mean = ms[:, :Z_DIM]                                # [tb, Z]
        std = ms[:, 128:128 + Z_DIM]                        # [tb, Z]

        # ---- Reparameterize (z = mean + sqrt(std) * eps, as in the module) ----
        z = (mean + jnp.sqrt(std) * eps).astype(jnp.bfloat16)

        # ---- Decoder ----
        h2 = jnp.dot(z, w_d1_ref[...],
                     preferred_element_type=jnp.float32) + b_d1_ref[...]
        h2 = jnp.maximum(h2, 0.0).astype(jnp.bfloat16)      # ReLU, [tb, 512]
        logits = jnp.dot(h2, w_d2_ref[...],
                         preferred_element_type=jnp.float32) + b_d2_ref[...]

        # ---- ELBO terms ----
        # BCE-with-logits == -x*log(sigmoid(l)) - (1-x)*log(1-sigmoid(l))
        #                 == max(l,0) - l*x + log(1+exp(-|l|))
        # Padded lanes have logit = -30 and x = 0 -> contribute ~0.
        neg_abs = -jnp.abs(logits)
        if use_bf16_eup:
            # v6e/v7x: EUP bf16 path ~2x the f32 rate; accumulation stays f32.
            softplus = jnp.log(
                1.0 + jnp.exp(neg_abs.astype(jnp.bfloat16))).astype(jnp.float32)
        else:
            softplus = jnp.log(1.0 + jnp.exp(neg_abs))
        x_f32 = x_bf.astype(jnp.float32)      # short live range (only for l*x)
        bce = jnp.maximum(logits, 0.0) - logits * x_f32 + softplus
        l_recon = jnp.sum(bce, axis=1, keepdims=True)       # [tb, 1]

        l_reg = -0.5 * jnp.sum(1.0 + std - mean * mean + jnp.log(std + STABILITY),
                               axis=1, keepdims=True)       # [tb, 1]
        per_sample = l_recon + l_reg                        # [tb, 1]

        if need_mask:
            # NaN-safe select (padded rows may produce NaN via sqrt/log of a
            # non-positive std head); only emitted when the batch is padded.
            rows = (jax.lax.broadcasted_iota(jnp.int32, (tb, 1), 0)
                    + pl.program_id(0) * tb)
            per_sample = jnp.where(rows < batch_real, per_sample, 0.0)

        out_ref[0, 0] = jnp.sum(per_sample)                 # per-tile sum

    return vae_kernel


def vae_forward(x_img, eps, kp):
    """x_img: [B, 1, 28, 28]; eps: [B, Z_DIM] reparameterization noise.
    `kp` are kernel-ready params from prepare_params()."""
    batch = x_img.shape[0]
    kind = _chip_kind()
    use_bf16_eup = _use_bf16_eup(kind)
    two_tc = _two_tensorcores(kind)

    # torch .view(-1, 784), then zero-pad to the lane-dense 896 slab.
    x = x_img.reshape(batch, IN_DIM).astype(jnp.bfloat16)
    x = jnp.pad(x, ((0, 0), (0, IN_PAD - IN_DIM)))
    eps = eps.astype(jnp.float32)

    def _r8(n):
        return ((n + 7) // 8) * 8

    # Batch tile: multiple of 8 sublanes, up to 1024 rows (amortize per-step
    # overhead).  On 2-TC chips (v7x) make sure there are >= 2 tiles so both
    # TensorCores get work under the "parallel" grid axis.
    tb = min(1024, _r8(batch))
    if two_tc and batch > 8 and _r8(batch) <= tb:
        tb = _r8(-(-batch // 2))
    b_pad = ((batch + tb - 1) // tb) * tb
    if b_pad != batch:
        x = jnp.pad(x, ((0, b_pad - batch), (0, 0)))
        eps = jnp.pad(eps, ((0, b_pad - batch), (0, 0)))
    num_tiles = b_pad // tb
    need_mask = b_pad != batch

    batch_map = lambda i: (i, 0)   # streams along the batch axis
    const_map = lambda i: (0, 0)   # same block every step -> stays VMEM-resident

    in_specs = [
        pl.BlockSpec((tb, IN_PAD), batch_map),               # x (bf16)
        pl.BlockSpec((tb, Z_DIM), batch_map),                # eps (f32)
        pl.BlockSpec((IN_PAD, HIDDEN_PAD), const_map),       # w_in
        pl.BlockSpec((1, HIDDEN_PAD), const_map),            # b_in
        pl.BlockSpec((HIDDEN_PAD, MS_PAD), const_map),       # w_ms (fused mu|std)
        pl.BlockSpec((1, MS_PAD), const_map),                # b_ms
        pl.BlockSpec((Z_DIM, HIDDEN_PAD), const_map),        # w_d1
        pl.BlockSpec((1, HIDDEN_PAD), const_map),            # b_d1
        pl.BlockSpec((HIDDEN_PAD, IN_PAD), const_map),       # w_d2
        pl.BlockSpec((1, IN_PAD), const_map),                # b_d2
    ]
    out_specs = pl.BlockSpec((1, 1), batch_map,
                             memory_space=pltpu.MemorySpace.SMEM)

    matmul_terms = (IN_PAD * HIDDEN_PAD + HIDDEN_PAD * MS_PAD
                    + Z_DIM * HIDDEN_PAD + HIDDEN_PAD * IN_PAD)
    weight_bytes = 2 * matmul_terms                          # bf16 weights
    bias_bytes = 4 * (2 * HIDDEN_PAD + MS_PAD + IN_PAD)      # f32 biases
    act_bytes = b_pad * (2 * IN_PAD + 4 * Z_DIM) + num_tiles * 4
    cost = pl.CostEstimate(
        flops=2 * b_pad * matmul_terms,
        transcendentals=b_pad * (2 * IN_PAD + 2 * Z_DIM),
        bytes_accessed=weight_bytes + bias_bytes + act_bytes)

    partial = pl.pallas_call(
        _make_vae_kernel(tb, batch, need_mask, use_bf16_eup),
        out_shape=jax.ShapeDtypeStruct((num_tiles, 1), jnp.float32),
        grid=(num_tiles,),
        in_specs=in_specs,
        out_specs=out_specs,
        compiler_params=pltpu.CompilerParams(
            dimension_semantics=("parallel",),
            vmem_limit_bytes=32 * 1024 * 1024),
        cost_estimate=cost,
    )(x, eps,
      kp["w_in"], kp["b_in"], kp["w_ms"], kp["b_ms"],
      kp["w_d1"], kp["b_d1"], kp["w_d2"], kp["b_d2"])

    return jnp.sum(partial) / batch


def init_params(key):
    """Logical (module-shaped) f32 parameters. Weights are stored [in, out]
    (transpose of nn.Linear.weight) so forward is x @ W + b. b_std starts at
    1.0 so the predicted std stays positive (sqrt/log finite), as a trained
    VAE would behave."""
    ks = jax.random.split(key, 5)
    scale = 0.02
    return {
        "w_in":  scale * jax.random.normal(ks[0], (IN_DIM, HIDDEN), jnp.float32),
        "b_in":  jnp.zeros((1, HIDDEN), jnp.float32),
        "w_mu":  scale * jax.random.normal(ks[1], (HIDDEN, Z_DIM), jnp.float32),
        "b_mu":  jnp.zeros((1, Z_DIM), jnp.float32),
        "w_std": scale * jax.random.normal(ks[2], (HIDDEN, Z_DIM), jnp.float32),
        "b_std": jnp.ones((1, Z_DIM), jnp.float32),
        "w_d1":  scale * jax.random.normal(ks[3], (Z_DIM, HIDDEN), jnp.float32),
        "b_d1":  jnp.zeros((1, HIDDEN), jnp.float32),
        "w_d2":  scale * jax.random.normal(ks[4], (HIDDEN, IN_DIM), jnp.float32),
        "b_d2":  jnp.zeros((1, IN_DIM), jnp.float32),
    }


def prepare_params(p):
    """Kernel-ready params:
      * hidden 500 -> 512 zero-padding (inert: padded units are ReLU(0)=0 and
        feed zero rows of the next layer),
      * input/output 784 -> 896 padding: w_in gains zero rows (x is zero-padded
        to match), w_d2 gains zero output columns and b_d2 gains -30 entries so
        the padded BCE lanes contribute ~exp(-30) ~= 0,
      * fused mu/std head laid out at lanes 0 / 128 of a [512, 256] matrix,
      * weight matrices cast to bf16 (biases stay f32)."""
    ph = HIDDEN_PAD - HIDDEN
    pi = IN_PAD - IN_DIM

    w_ms = jnp.zeros((HIDDEN_PAD, MS_PAD), jnp.float32)
    w_ms = w_ms.at[:HIDDEN, :Z_DIM].set(p["w_mu"])
    w_ms = w_ms.at[:HIDDEN, 128:128 + Z_DIM].set(p["w_std"])
    b_ms = jnp.zeros((1, MS_PAD), jnp.float32)
    b_ms = b_ms.at[:, :Z_DIM].set(p["b_mu"])
    b_ms = b_ms.at[:, 128:128 + Z_DIM].set(p["b_std"])

    return {
        "w_in": jnp.pad(p["w_in"], ((0, pi), (0, ph))).astype(jnp.bfloat16),
        "b_in": jnp.pad(p["b_in"], ((0, 0), (0, ph))).astype(jnp.float32),
        "w_ms": w_ms.astype(jnp.bfloat16),
        "b_ms": b_ms.astype(jnp.float32),
        "w_d1": jnp.pad(p["w_d1"], ((0, 0), (0, ph))).astype(jnp.bfloat16),
        "b_d1": jnp.pad(p["b_d1"], ((0, 0), (0, ph))).astype(jnp.float32),
        "w_d2": jnp.pad(p["w_d2"], ((0, ph), (0, pi))).astype(jnp.bfloat16),
        "b_d2": jnp.pad(p["b_d2"], ((0, 0), (0, pi)),
                        constant_values=-30.0).astype(jnp.float32),
    }


def vae_reference(x_img, eps, p):
    """Pure-JAX mirror of the PyTorch forward, using the same bf16-matmul /
    f32-accumulation policy as the kernel (transcendentals stay f32) so the
    check isolates kernel correctness from matmul dtype effects."""
    def mm(a, w):
        return jnp.dot(a.astype(jnp.bfloat16), w.astype(jnp.bfloat16),
                       preferred_element_type=jnp.float32)

    x = x_img.reshape(-1, IN_DIM).astype(jnp.bfloat16).astype(jnp.float32)
    h = jnp.maximum(mm(x, p["w_in"]) + p["b_in"], 0.0)
    mean = mm(h, p["w_mu"]) + p["b_mu"]
    std = mm(h, p["w_std"]) + p["b_std"]
    z = mean + jnp.sqrt(std) * eps
    h2 = jnp.maximum(mm(z, p["w_d1"]) + p["b_d1"], 0.0)
    out = jax.nn.sigmoid(mm(h2, p["w_d2"]) + p["b_d2"])
    l_recon = jnp.sum(-x * jnp.log(out) - (1.0 - x) * jnp.log(1.0 - out), axis=1)
    l_reg = -0.5 * jnp.sum(1.0 + std - mean ** 2 + jnp.log(std + STABILITY), axis=1)
    return jnp.mean(l_recon + l_reg)


if __name__ == "__main__":
    B = 8
    key = jax.random.PRNGKey(0)
    k_param, k_x, k_eps = jax.random.split(key, 3)

    params = init_params(k_param)
    kparams = prepare_params(params)

    x_img = jax.random.uniform(k_x, (B, 1, 28, 28), jnp.float32)  # images in [0,1)
    eps = jax.random.normal(k_eps, (B, Z_DIM), jnp.float32)       # torch.randn noise

    neg_elbo = jax.block_until_ready(vae_forward(x_img, eps, kparams))
    ref = jax.block_until_ready(vae_reference(x_img, eps, params))

    # Looser tolerance when the bf16 EUP path is active (v6e/v7x): the bf16
    # softplus rounds each of the 784 BCE terms at ~2^-9, the f32 path matches
    # the reference to ~2e-3.
    tol = 1e-2 if _use_bf16_eup(_chip_kind()) else 2e-3
    assert jnp.isfinite(neg_elbo), f"non-finite result: {neg_elbo}"
    assert jnp.allclose(neg_elbo, ref, rtol=tol, atol=tol), (neg_elbo, ref)
    print("KERNEL_OK")
</pallas_src>

<mosaic_0001>
module attributes {stable_mosaic.version = 11 : i64} {
  func.func @vae_kernel(%arg0: i32, %arg1: memref<8x896xbf16, #tpu.memory_space<vmem>>, %arg2: memref<8x20xf32, #tpu.memory_space<vmem>>, %arg3: memref<896x512xbf16, #tpu.memory_space<vmem>>, %arg4: memref<1x512xf32, #tpu.memory_space<vmem>>, %arg5: memref<512x256xbf16, #tpu.memory_space<vmem>>, %arg6: memref<1x256xf32, #tpu.memory_space<vmem>>, %arg7: memref<20x512xbf16, #tpu.memory_space<vmem>>, %arg8: memref<1x512xf32, #tpu.memory_space<vmem>>, %arg9: memref<512x896xbf16, #tpu.memory_space<vmem>>, %arg10: memref<1x896xf32, #tpu.memory_space<vmem>>, %arg11: memref<1x1xf32, #tpu.memory_space<smem>>) attributes {dimension_semantics = [#tpu.dimension_semantics<parallel>], iteration_bounds = array<i64: 1>, scalar_prefetch = 0 : i64, scratch_operands = 0 : i64, tpu.core_type = #tpu.core_type<tc>, window_params = [{transform_indices = @transform_0, window_bounds = array<i64: 8, 896>}, {transform_indices = @transform_1, window_bounds = array<i64: 8, 20>}, {pipeline_mode = #tpu.pipeline_mode<synchronous>, transform_indices = @transform_2, window_bounds = array<i64: 896, 512>}, {pipeline_mode = #tpu.pipeline_mode<synchronous>, transform_indices = @transform_3, window_bounds = array<i64: 1, 512>}, {pipeline_mode = #tpu.pipeline_mode<synchronous>, transform_indices = @transform_4, window_bounds = array<i64: 512, 256>}, {pipeline_mode = #tpu.pipeline_mode<synchronous>, transform_indices = @transform_5, window_bounds = array<i64: 1, 256>}, {pipeline_mode = #tpu.pipeline_mode<synchronous>, transform_indices = @transform_6, window_bounds = array<i64: 20, 512>}, {pipeline_mode = #tpu.pipeline_mode<synchronous>, transform_indices = @transform_7, window_bounds = array<i64: 1, 512>}, {pipeline_mode = #tpu.pipeline_mode<synchronous>, transform_indices = @transform_8, window_bounds = array<i64: 512, 896>}, {pipeline_mode = #tpu.pipeline_mode<synchronous>, transform_indices = @transform_9, window_bounds = array<i64: 1, 896>}, {transform_indices = @transform_10, window_bounds = array<i64: 1, 1>}]} {
    %c0 = arith.constant 0 : index
    %c0_0 = arith.constant 0 : index
    %0 = vector.load %arg1[%c0, %c0_0] : memref<8x896xbf16, #tpu.memory_space<vmem>>, vector<8x896xbf16>
    %c0_1 = arith.constant 0 : index
    %c0_2 = arith.constant 0 : index
    %1 = vector.load %arg2[%c0_1, %c0_2] : memref<8x20xf32, #tpu.memory_space<vmem>>, vector<8x20xf32>
    %c0_3 = arith.constant 0 : index
    %c0_4 = arith.constant 0 : index
    %2 = vector.load %arg3[%c0_3, %c0_4] : memref<896x512xbf16, #tpu.memory_space<vmem>>, vector<896x512xbf16>
    %cst = arith.constant dense<0.000000e+00> : vector<8x512xf32>
    %3 = tpu.matmul %0, %2, %cst {dimension_numbers = #tpu.dot_dimension_numbers<[1], [0], [0], [1], [0, 0, 1, 1], [], []>} : vector<8x896xbf16>, vector<896x512xbf16>, vector<8x512xf32> -> vector<8x512xf32>
    %c0_5 = arith.constant 0 : index
    %c0_6 = arith.constant 0 : index
    %4 = vector.load %arg4[%c0_5, %c0_6] : memref<1x512xf32, #tpu.memory_space<vmem>>, vector<1x512xf32>
    %5 = vector.broadcast %4 : vector<1x512xf32> to vector<8x512xf32>
    %6 = arith.addf %3, %5 : vector<8x512xf32>
    %cst_7 = arith.constant 0.000000e+00 : f32
    %7 = vector.broadcast %cst_7 : f32 to vector<8x512xf32>
    %8 = arith.maximumf %6, %7 : vector<8x512xf32>
    %9 = arith.truncf %8 : vector<8x512xf32> to vector<8x512xbf16>
    %c0_8 = arith.constant 0 : index
    %c0_9 = arith.constant 0 : index
    %10 = vector.load %arg5[%c0_8, %c0_9] : memref<512x256xbf16, #tpu.memory_space<vmem>>, vector<512x256xbf16>
    %cst_10 = arith.constant dense<0.000000e+00> : vector<8x256xf32>
    %11 = tpu.matmul %9, %10, %cst_10 {dimension_numbers = #tpu.dot_dimension_numbers<[1], [0], [0], [1], [0, 0, 1, 1], [], []>} : vector<8x512xbf16>, vector<512x256xbf16>, vector<8x256xf32> -> vector<8x256xf32>
    %c0_11 = arith.constant 0 : index
    %c0_12 = arith.constant 0 : index
    %12 = vector.load %arg6[%c0_11, %c0_12] : memref<1x256xf32, #tpu.memory_space<vmem>>, vector<1x256xf32>
    %13 = vector.broadcast %12 : vector<1x256xf32> to vector<8x256xf32>
    %14 = arith.addf %11, %13 : vector<8x256xf32>
    %15 = vector.extract_strided_slice %14 {offsets = [0, 0], sizes = [8, 20], strides = [1, 1]} : vector<8x256xf32> to vector<8x20xf32>
    %16 = vector.extract_strided_slice %14 {offsets = [0, 128], sizes = [8, 20], strides = [1, 1]} : vector<8x256xf32> to vector<8x20xf32>
    %17 = math.sqrt %16 : vector<8x20xf32>
    %18 = arith.mulf %17, %1 : vector<8x20xf32>
    %19 = arith.addf %15, %18 : vector<8x20xf32>
    %20 = arith.truncf %19 : vector<8x20xf32> to vector<8x20xbf16>
    %c0_13 = arith.constant 0 : index
    %c0_14 = arith.constant 0 : index
    %21 = vector.load %arg7[%c0_13, %c0_14] : memref<20x512xbf16, #tpu.memory_space<vmem>>, vector<20x512xbf16>
    %cst_15 = arith.constant dense<0.000000e+00> : vector<8x512xf32>
    %22 = tpu.matmul %20, %21, %cst_15 {dimension_numbers = #tpu.dot_dimension_numbers<[1], [0], [0], [1], [0, 0, 1, 1], [], []>} : vector<8x20xbf16>, vector<20x512xbf16>, vector<8x512xf32> -> vector<8x512xf32>
    %c0_16 = arith.constant 0 : index
    %c0_17 = arith.constant 0 : index
    %23 = vector.load %arg8[%c0_16, %c0_17] : memref<1x512xf32, #tpu.memory_space<vmem>>, vector<1x512xf32>
    %24 = vector.broadcast %23 : vector<1x512xf32> to vector<8x512xf32>
    %25 = arith.addf %22, %24 : vector<8x512xf32>
    %cst_18 = arith.constant 0.000000e+00 : f32
    %26 = vector.broadcast %cst_18 : f32 to vector<8x512xf32>
    %27 = arith.maximumf %25, %26 : vector<8x512xf32>
    %28 = arith.truncf %27 : vector<8x512xf32> to vector<8x512xbf16>
    %c0_19 = arith.constant 0 : index
    %c0_20 = arith.constant 0 : index
    %29 = vector.load %arg9[%c0_19, %c0_20] : memref<512x896xbf16, #tpu.memory_space<vmem>>, vector<512x896xbf16>
    %cst_21 = arith.constant dense<0.000000e+00> : vector<8x896xf32>
    %30 = tpu.matmul %28, %29, %cst_21 {dimension_numbers = #tpu.dot_dimension_numbers<[1], [0], [0], [1], [0, 0, 1, 1], [], []>} : vector<8x512xbf16>, vector<512x896xbf16>, vector<8x896xf32> -> vector<8x896xf32>
    %c0_22 = arith.constant 0 : index
    %c0_23 = arith.constant 0 : index
    %31 = vector.load %arg10[%c0_22, %c0_23] : memref<1x896xf32, #tpu.memory_space<vmem>>, vector<1x896xf32>
    %32 = vector.broadcast %31 : vector<1x896xf32> to vector<8x896xf32>
    %33 = arith.addf %30, %32 : vector<8x896xf32>
    %34 = math.absf %33 : vector<8x896xf32>
    %cst_24 = arith.constant 0.000000e+00 : f32
    %35 = vector.broadcast %cst_24 : f32 to vector<8x896xf32>
    %36 = arith.subf %35, %34 : vector<8x896xf32>
    %37 = math.exp %36 : vector<8x896xf32>
    %cst_25 = arith.constant 1.000000e+00 : f32
    %38 = vector.broadcast %cst_25 : f32 to vector<8x896xf32>
    %39 = arith.addf %38, %37 : vector<8x896xf32>
    %40 = math.log %39 : vector<8x896xf32>
    %41 = arith.extf %0 : vector<8x896xbf16> to vector<8x896xf32>
    %cst_26 = arith.constant 0.000000e+00 : f32
    %42 = vector.broadcast %cst_26 : f32 to vector<8x896xf32>
    %43 = arith.maximumf %33, %42 : vector<8x896xf32>
    %44 = arith.mulf %33, %41 : vector<8x896xf32>
    %45 = arith.subf %43, %44 : vector<8x896xf32>
    %46 = arith.addf %45, %40 : vector<8x896xf32>
    %cst_27 = arith.constant dense<0.000000e+00> : vector<8xf32>
    %47 = vector.multi_reduction <add>, %46, %cst_27 [1] : vector<8x896xf32> to vector<8xf32>
    %48 = vector.shape_cast %47 : vector<8xf32> to vector<8x1xf32>
    %cst_28 = arith.constant 1.000000e+00 : f32
    %49 = vector.broadcast %cst_28 : f32 to vector<8x20xf32>
    %50 = arith.addf %49, %16 : vector<8x20xf32>
    %51 = arith.mulf %15, %15 : vector<8x20xf32>
    %52 = arith.subf %50, %51 : vector<8x20xf32>
    %cst_29 = arith.constant 9.99999997E-7 : f32
    %53 = vector.broadcast %cst_29 : f32 to vector<8x20xf32>
    %54 = arith.addf %16, %53 : vector<8x20xf32>
    %55 = math.log %54 : vector<8x20xf32>
    %56 = arith.addf %52, %55 : vector<8x20xf32>
    %cst_30 = arith.constant dense<0.000000e+00> : vector<8xf32>
    %57 = vector.multi_reduction <add>, %56, %cst_30 [1] : vector<8x20xf32> to vector<8xf32>
    %58 = vector.shape_cast %57 : vector<8xf32> to vector<8x1xf32>
    %cst_31 = arith.constant -5.000000e-01 : f32
    %59 = vector.broadcast %cst_31 : f32 to vector<8x1xf32>
    %60 = arith.mulf %59, %58 : vector<8x1xf32>
    %61 = arith.addf %48, %60 : vector<8x1xf32>
    %62 = vector.shape_cast %61 : vector<8x1xf32> to vector<1x8x1xf32>
    %cst_32 = arith.constant dense<0.000000e+00> : vector<1xf32>
    %63 = vector.multi_reduction <add>, %62, %cst_32 [1, 2] : vector<1x8x1xf32> to vector<1xf32>
    %64 = vector.shape_cast %63 : vector<1xf32> to vector<1x1x1xf32>
    %65 = vector.extract %64[0, 0, 0] : f32 from vector<1x1x1xf32>
    %c0_33 = arith.constant 0 : index
    %c0_34 = arith.constant 0 : index
    %66 = memref.load %arg11[%c0_33, %c0_34] : memref<1x1xf32, #tpu.memory_space<smem>>
    memref.store %65, %arg11[%c0_33, %c0_34] : memref<1x1xf32, #tpu.memory_space<smem>>
    return
  }
  func.func @transform_0(%arg0: i32) -> (i32, i32) {
    %c0_i32 = arith.constant 0 : i32
    %c0_i32_0 = arith.constant 0 : i32
    return %arg0, %c0_i32 : i32, i32
  }
  func.func @transform_1(%arg0: i32) -> (i32, i32) {
    %c0_i32 = arith.constant 0 : i32
    %c0_i32_0 = arith.constant 0 : i32
    return %arg0, %c0_i32 : i32, i32
  }
  func.func @transform_2(%arg0: i32) -> (i32, i32) {
    %c0_i32 = arith.constant 0 : i32
    %c0_i32_0 = arith.constant 0 : i32
    %c0_i32_1 = arith.constant 0 : i32
    return %c0_i32, %c0_i32_0 : i32, i32
  }
  func.func @transform_3(%arg0: i32) -> (i32, i32) {
    %c0_i32 = arith.constant 0 : i32
    %c0_i32_0 = arith.constant 0 : i32
    %c0_i32_1 = arith.constant 0 : i32
    return %c0_i32, %c0_i32_0 : i32, i32
  }
  func.func @transform_4(%arg0: i32) -> (i32, i32) {
    %c0_i32 = arith.constant 0 : i32
    %c0_i32_0 = arith.constant 0 : i32
    %c0_i32_1 = arith.constant 0 : i32
    return %c0_i32, %c0_i32_0 : i32, i32
  }
  func.func @transform_5(%arg0: i32) -> (i32, i32) {
    %c0_i32 = arith.constant 0 : i32
    %c0_i32_0 = arith.constant 0 : i32
    %c0_i32_1 = arith.constant 0 : i32
    return %c0_i32, %c0_i32_0 : i32, i32
  }
  func.func @transform_6(%arg0: i32) -> (i32, i32) {
    %c0_i32 = arith.constant 0 : i32
    %c0_i32_0 = arith.constant 0 : i32
    %c0_i32_1 = arith.constant 0 : i32
    return %c0_i32, %c0_i32_0 : i32, i32
  }
  func.func @transform_7(%arg0: i32) -> (i32, i32) {
    %c0_i32 = arith.constant 0 : i32
    %c0_i32_0 = arith.constant 0 : i32
    %c0_i32_1 = arith.constant 0 : i32
    return %c0_i32, %c0_i32_0 : i32, i32
  }
  func.func @transform_8(%arg0: i32) -> (i32, i32) {
    %c0_i32 = arith.constant 0 : i32
    %c0_i32_0 = arith.constant 0 : i32
    %c0_i32_1 = arith.constant 0 : i32
    return %c0_i32, %c0_i32_0 : i32, i32
  }
  func.func @transform_9(%arg0: i32) -> (i32, i32) {
    %c0_i32 = arith.constant 0 : i32
    %c0_i32_0 = arith.constant 0 : i32
    %c0_i32_1 = arith.constant 0 : i32
    return %c0_i32, %c0_i32_0 : i32, i32
  }
  func.func @transform_10(%arg0: i32) -> (i32, i32) {
    %c0_i32 = arith.constant 0 : i32
    %c0_i32_0 = arith.constant 0 : i32
    return %arg0, %c0_i32 : i32, i32
  }
}

</mosaic_0001>

<bundles_post_ra>
// kernel: tpu_custom_call.1
= control target key start
LH: loop header
LB: loop body
LE: loop exit
PB: predicated region body
PF: predicated region fallthrough
CT: control target
= control target key end

     0   :  { %15 = vsyncpa [#allocation3], 0  ;;  %s6293_s0 = inlined_call_operand.hbm [shape: bf16[8,896], index: 0, kind: input, shape index: {}]   ;;  %s6294_s1 = inlined_call_operand.hbm [shape: f32[8,20], index: 1, kind: input, shape index: {}]   ;;  %s6295_s2 = inlined_call_operand.hbm [shape: bf16[896,512], index: 2, kind: input, shape index: {}]   ;;  %s6296_s3 = inlined_call_operand.vmem [shape: f32[1,512], index: 3, kind: input, shape index: {}]   ;;  %s6297_s4 = inlined_call_operand.hbm [shape: bf16[512,256], index: 4, kind: input, shape index: {}]   ;;  %s6298_s5 = inlined_call_operand.vmem [shape: f32[1,256], index: 5, kind: input, shape index: {}]   ;;  %s6299_s6 = inlined_call_operand.hbm [shape: bf16[20,512], index: 6, kind: input, shape index: {}]   ;;  %s6300_s7 = inlined_call_operand.vmem [shape: f32[1,512], index: 7, kind: input, shape index: {}]   ;;  %s6301_s8 = inlined_call_operand.hbm [shape: bf16[512,896], index: 8, kind: input, shape index: {}]   ;;  %s6302_s9 = inlined_call_operand.vmem [shape: f32[1,896], index: 9, kind: input, shape index: {}]   ;;  %s6303_s10 = inlined_call_operand.hbm [shape: f32[1,1], index: 10, kind: output, shape index: {}]  }
   0x1   :  { %16 = vsyncpa [#allocation6], 0 }
   0x2   :  { %17 = vsyncpa [#allocation9], 0 }
   0x3   :  { %18 = vsyncpa [#allocation12], 0 }
   0x4   :  { %19 = vsyncpa [#allocation4], 0  ;;  %s6005_s13 = smov [#allocation5]   ;;  %s6006_s15 = smov [#allocation8]  }
   0x5   :  { %s36_s14 = sshll.u32 %s6005_s13, 4  ;;  %s59_s16 = sshll.u32 %s6006_s15, 4  ;;  %s37_s14 = int_to_ptr.vmem [resolvable:$true] %s36_s14  ;;  %s6074_s16 = int_to_ptr.vmem [resolvable:$true] %s59_s16 }
   0x6   :  { %s5853_s19 = scalar_lea.hbm %s6294_s1, 128 }
   0x7   :  { %p5854_p0 = scmp.ne.s32.totalorder %s6294_s1, %s5853_s19  ;;  %p5857_p1 = scmp.lt.u32.totalorder %s5853_s19, %s6294_s1 }
   0x9   :  { %p5859_p2 = pnand %p5857_p1, %p5854_p0 }
   0xb   :  { %5862 = shalt.err (!%p5859_p2)
}
   0xc   :  { %s5863_s24 = scalar_lea.vmem %s37_s14, 128  ;;  %p5868_p4 = scmp.lt.s32.totalorder %s37_s14, %s37_s14 }
   0xd   :  { %p5864_p3 = scmp.ne.s32.totalorder %s37_s14, %s5863_s24  ;;  %p5869_p5 = scmp.lt.s32.totalorder %s5863_s24, %s5863_s24 }
   0xf   :  { %p5870_p6 = por %p5869_p5, %p5868_p4 }
  0x11   :  { %p5871_p7 = pnand %p5870_p6, %p5864_p3 }
  0x13   :  { %5874 = shalt.err (!%p5871_p7)
}
  0x14   :  { %39 = dma.hbm_to_vmem [thread:$0]  %s6294_s1, 128, %s37_s14, [#allocation6]  }
  0x15   :  { %s5875_s29 = scalar_lea.hbm %s6297_s4, 8192 }
  0x16   :  { %p5876_p8 = scmp.ne.s32.totalorder %s6297_s4, %s5875_s29  ;;  %p5879_p9 = scmp.lt.u32.totalorder %s5875_s29, %s6297_s4 }
  0x18   :  { %p5881_p10 = pnand %p5879_p9, %p5876_p8 }
  0x1a   :  { %5884 = shalt.err (!%p5881_p10)
}
  0x1b   :  { %s5885_s15 = scalar_lea.vmem %s6074_s16, 8192  ;;  %p5890_p12 = scmp.lt.s32.totalorder %s6074_s16, %s6074_s16 }
  0x1c   :  { %p5886_p11 = scmp.ne.s32.totalorder %s6074_s16, %s5885_s15  ;;  %p5891_p13 = scmp.lt.s32.totalorder %s5885_s15, %s5885_s15 }
  0x1e   :  { %p5892_p0 = por %p5891_p13, %p5890_p12 }
  0x20   :  { %p5893_p1 = pnand %p5892_p0, %p5886_p11 }
  0x22   :  { %5896 = shalt.err (!%p5893_p1)
}
  0x23   :  { %s6007_s1 = smov 128   ;;  %s6008_s14 = smov 8  }
  0x24   :  { %65 = dma.hbm_to_vmem [thread:$0]  %s6297_s4, 8192, %s6074_s16, [#allocation9], %s6007_s1, %s6007_s1, %s6008_s14  }
  0x25   :  { %s6009_s19 = smov [#allocation2]   ;;  %s6010_s21 = smov [#allocation7]  }
  0x26   :  { %s26_s20 = sshll.u32 %s6009_s19, 4  ;;  %s45_s22 = sshll.u32 %s6010_s21, 4  ;;  %s27_s20 = int_to_ptr.vmem [resolvable:$true] %s26_s20  ;;  %s6105_s22 = int_to_ptr.vmem [resolvable:$true] %s45_s22 }
  0x27   :  { %s5897_s25 = scalar_lea.hbm %s6293_s0, 448 }
  0x28   :  { %p5898_p2 = scmp.ne.s32.totalorder %s6293_s0, %s5897_s25  ;;  %p5901_p3 = scmp.lt.u32.totalorder %s5897_s25, %s6293_s0 }
  0x2a   :  { %p5903_p4 = pnand %p5901_p3, %p5898_p2 }
  0x2c   :  { %5906 = shalt.err (!%p5903_p4)
}
  0x2d   :  { %s5907_s4 = scalar_lea.vmem %s27_s20, 448  ;;  %p5912_p6 = scmp.lt.s32.totalorder %s27_s20, %s27_s20 }
  0x2e   :  { %p5908_p5 = scmp.ne.s32.totalorder %s27_s20, %s5907_s4  ;;  %p5913_p7 = scmp.lt.s32.totalorder %s5907_s4, %s5907_s4 }
  0x30   :  { %p5914_p8 = por %p5913_p7, %p5912_p6 }
  0x32   :  { %p5915_p9 = pnand %p5914_p8, %p5908_p5 }
  0x34   :  { %5918 = shalt.err (!%p5915_p9)
}
  0x35   :  { %29 = dma.hbm_to_vmem [thread:$0]  %s6293_s0, 448, %s27_s20, [#allocation3]  }
  0x36   :  { %s5919_s13 = scalar_lea.hbm %s6295_s2, 28672 }
  0x37   :  { %p5920_p10 = scmp.ne.s32.totalorder %s6295_s2, %s5919_s13  ;;  %p5923_p11 = scmp.lt.u32.totalorder %s5919_s13, %s6295_s2 }
  0x39   :  { %p5925_p12 = pnand %p5923_p11, %p5920_p10 }
  0x3b   :  { %5928 = shalt.err (!%p5925_p12)
}
  0x3c   :  { %s5929_s18 = scalar_lea.vmem %s6105_s22, 28672  ;;  %p5934_p0 = scmp.lt.s32.totalorder %s6105_s22, %s6105_s22 }
  0x3d   :  { %p5930_p13 = scmp.ne.s32.totalorder %s6105_s22, %s5929_s18  ;;  %p5935_p1 = scmp.lt.s32.totalorder %s5929_s18, %s5929_s18 }
  0x3f   :  { %p5936_p2 = por %p5935_p1, %p5934_p0 }
  0x41   :  { %p5937_p3 = pnand %p5936_p2, %p5930_p13 }
  0x43   :  { %5940 = shalt.err (!%p5937_p3)
}
  0x44   :  { %s6011_s0 = smov 256   ;;  %s6012_s19 = smov 16  }
  0x45   :  { %51 = dma.hbm_to_vmem [thread:$0]  %s6295_s2, 28672, %s6105_s22, [#allocation6], %s6011_s0, %s6011_s0, %s6012_s19  }
  0x46   :  { %s6013_s23 = smov [#allocation10]   ;;  %s6014_s25 = smov [#allocation11]  }
  0x47   :  { %s73_s24 = sshll.u32 %s6013_s23, 4  ;;  %s87_s26 = sshll.u32 %s6014_s25, 4  ;;  %s74_s24 = int_to_ptr.vmem [resolvable:$true] %s73_s24  ;;  %s6136_s26 = int_to_ptr.vmem [resolvable:$true] %s87_s26 }
  0x48   :  { %s5941_s29 = scalar_lea.hbm %s6299_s6, 768 }
  0x49   :  { %p5942_p4 = scmp.ne.s32.totalorder %s6299_s6, %s5941_s29  ;;  %p5945_p5 = scmp.lt.u32.totalorder %s5941_s29, %s6299_s6 }
  0x4b   :  { %p5947_p6 = pnand %p5945_p5, %p5942_p4 }
  0x4d   :  { %5950 = shalt.err (!%p5947_p6)
}
  0x4e   :  { %s5951_s2 = scalar_lea.vmem %s74_s24, 768  ;;  %p5956_p8 = scmp.lt.s32.totalorder %s74_s24, %s74_s24 }
  0x4f   :  { %p5952_p7 = scmp.ne.s32.totalorder %s74_s24, %s5951_s2  ;;  %p5957_p9 = scmp.lt.s32.totalorder %s5951_s2, %s5951_s2 }
  0x51   :  { %p5958_p10 = por %p5957_p9, %p5956_p8 }
  0x53   :  { %p5959_p11 = pnand %p5958_p10, %p5952_p7 }
  0x55   :  { %5962 = shalt.err (!%p5959_p11)
}
  0x56   :  { %79 = dma.hbm_to_vmem [thread:$0]  %s6299_s6, 768, %s74_s24, [#allocation9], %s6011_s0, %s6011_s0, %s6012_s19  }
  0x57   :  { %s5963_s1 = scalar_lea.hbm %s6301_s8, 28672 }
  0x58   :  { %p5964_p12 = scmp.ne.s32.totalorder %s6301_s8, %s5963_s1  ;;  %p5967_p13 = scmp.lt.u32.totalorder %s5963_s1, %s6301_s8 }
  0x5a   :  { %p5969_p0 = pnand %p5967_p13, %p5964_p12 }
  0x5c   :  { %5972 = shalt.err (!%p5969_p0)
}
  0x5d   :  { %s5973_s21 = scalar_lea.vmem %s6136_s26, 28672  ;;  %p5978_p2 = scmp.lt.s32.totalorder %s6136_s26, %s6136_s26 }
  0x5e   :  { %p5974_p1 = scmp.ne.s32.totalorder %s6136_s26, %s5973_s21  ;;  %p5979_p3 = scmp.lt.s32.totalorder %s5973_s21, %s5973_s21 }
  0x60   :  { %p5980_p4 = por %p5979_p3, %p5978_p2 }
  0x62   :  { %p5981_p5 = pnand %p5980_p4, %p5974_p1 }
  0x64   :  { %5984 = shalt.err (!%p5981_p5)
}
  0x65   :  { %s6015_s6 = smov 448   ;;  %s6016_s0 = smov 28  }
  0x66   :  { %93 = dma.hbm_to_vmem [thread:$0]  %s6301_s8, 28672, %s6136_s26, [#allocation12], %s6015_s6, %s6015_s6, %s6016_s0  }
  0x67   :  { %5995 = dma.done.wait [#allocation3], 448  }
  0x68   :  { %5996 = vsyncadd [#allocation3], 4294966848 }
  0x69   :  { %5997 = dma.done.wait [#allocation6], 28800  }
  0x6a   :  { %5998 = vsyncadd [#allocation6], 4294938496 }
  0x6b   :  { %5999 = dma.done.wait [#allocation9], 8960  }
  0x6c   :  { %6000 = vsyncadd [#allocation9], 4294958336 }
  0x6d   :  { %6001 = dma.done.wait [#allocation12], 28672  }
  0x6e   :  { %6002 = vsyncadd [#allocation12], 4294938624  ;;  %v5048_v0 = vld [vmem:[#allocation7 + $0x4] ss:$16 sps:$4 sm:$0xff]   ;;  %v5050_v1 = vld [vmem:[#allocation7 + $0xc] ss:$16 sps:$4 sm:$0xff]  }
  0x6f   :  { %1511 = vmatprep.subr.bf16.mxu0 %v5048_v0  ;;  %v5052_v2 = vld [vmem:[#allocation7] ss:$16 sps:$4 sm:$0xff]   ;;  %v5053_v3 = vld [vmem:[#allocation7 + $0x8] ss:$16 sps:$4 sm:$0xff]   ;;  %1675 = vmatprep.subr.bf16.mxu1 %v5050_v1  ;;  %v5054_v4 = vld [vmem:[#allocation7 + $0x24] ss:$16 sps:$4 sm:$0xff]  }
  0x70   :  { %1512 = vmatpush1.bf16.msra.mxu0 %v5052_v2  ;;  %1676 = vmatpush1.bf16.msra.mxu1 %v5053_v3  ;;  %v5056_v5 = vld [vmem:[#allocation7 + $0x2c] ss:$16 sps:$4 sm:$0xff]   ;;  %v5058_v6 = vld [vmem:[#allocation7 + $0x20] ss:$16 sps:$4 sm:$0xff]   ;;  %v5059_v7 = vld [vmem:[#allocation7 + $0x28] ss:$16 sps:$4 sm:$0xff]  }
  0x71   :  { %1513 = vmatprep.subr.bf16.mxu0 %v5054_v4  ;;  %1677 = vmatprep.subr.bf16.mxu1 %v5056_v5  ;;  %v5060_v8 = vld [vmem:[#allocation7 + $0x44] ss:$16 sps:$4 sm:$0xff]   ;;  %v5062_v9 = vld [vmem:[#allocation7 + $0x4c] ss:$16 sps:$4 sm:$0xff]   ;;  %v5064_v10 = vld [vmem:[#allocation7 + $0x40] ss:$16 sps:$4 sm:$0xff]  }
  0x72   :  { %v5065_v11 = vld [vmem:[#allocation7 + $0x48] ss:$16 sps:$4 sm:$0xff]   ;;  %v5066_v12 = vld [vmem:[#allocation7 + $0x64] ss:$16 sps:$4 sm:$0xff]   ;;  %v5068_v13 = vld [vmem:[#allocation7 + $0x6c] ss:$16 sps:$4 sm:$0xff]  }
  0x73   :  { %v5070_v14 = vld [vmem:[#allocation7 + $0x60] ss:$16 sps:$4 sm:$0xff]   ;;  %v5071_v15 = vld [vmem:[#allocation7 + $0x68] ss:$16 sps:$4 sm:$0xff]   ;;  %v5072_v16 = vld [vmem:[#allocation7 + $0x84] ss:$16 sps:$4 sm:$0xff]  }
  0x74   :  { %1514 = vmatpush1.bf16.msra.mxu0 %v5058_v6  ;;  %1678 = vmatpush1.bf16.msra.mxu1 %v5059_v7  ;;  %v5074_v17 = vld [vmem:[#allocation7 + $0x8c] ss:$16 sps:$4 sm:$0xff]   ;;  %v5076_v18 = vld [vmem:[#allocation7 + $0x80] ss:$16 sps:$4 sm:$0xff]   ;;  %v5077_v19 = vld [vmem:[#allocation7 + $0x88] ss:$16 sps:$4 sm:$0xff]  }
  0x75   :  { %1515 = vmatprep.subr.bf16.mxu0 %v5060_v8  ;;  %1679 = vmatprep.subr.bf16.mxu1 %v5062_v9  ;;  %v5078_v20 = vld [vmem:[#allocation7 + $0xa4] ss:$16 sps:$4 sm:$0xff]   ;;  %v5080_v21 = vld [vmem:[#allocation7 + $0xac] ss:$16 sps:$4 sm:$0xff]   ;;  %v5082_v22 = vld [vmem:[#allocation7 + $0xa0] ss:$16 sps:$4 sm:$0xff]  }
  0x76   :  { %v5083_v23 = vld [vmem:[#allocation7 + $0xa8] ss:$16 sps:$4 sm:$0xff]   ;;  %v5084_v24 = vld [vmem:[#allocation7 + $0xc4] ss:$16 sps:$4 sm:$0xff]   ;;  %v5086_v25 = vld [vmem:[#allocation7 + $0xcc] ss:$16 sps:$4 sm:$0xff]  }
  0x77   :  { %v5088_v26 = vld [vmem:[#allocation7 + $0xc0] ss:$16 sps:$4 sm:$0xff]   ;;  %v5089_v27 = vld [vmem:[#allocation7 + $0xc8] ss:$16 sps:$4 sm:$0xff]   ;;  %v5090_v28 = vld [vmem:[#allocation7 + $0xe4] ss:$16 sps:$4 sm:$0xff]  }
  0x78   :  { %1516 = vmatpush1.bf16.msra.mxu0 %v5064_v10  ;;  %1680 = vmatpush1.bf16.msra.mxu1 %v5065_v11  ;;  %v5092_v29 = vld [vmem:[#allocation7 + $0xec] ss:$16 sps:$4 sm:$0xff]   ;;  %v5094_v30 = vld [vmem:[#allocation7 + $0xe0] ss:$16 sps:$4 sm:$0xff]   ;;  %v5095_v31 = vld [vmem:[#allocation7 + $0xe8] ss:$16 sps:$4 sm:$0xff]  }
  0x79   :  { %1517 = vmatprep.subr.bf16.mxu0 %v5066_v12  ;;  %1681 = vmatprep.subr.bf16.mxu1 %v5068_v13  ;;  %v5096_v32 = vld [vmem:[#allocation7 + $0x104] ss:$16 sps:$4 sm:$0xff]   ;;  %v5098_v33 = vld [vmem:[#allocation7 + $0x10c] ss:$16 sps:$4 sm:$0xff]   ;;  %v5100_v34 = vld [vmem:[#allocation7 + $0x100] ss:$16 sps:$4 sm:$0xff]  }
  0x7a   :  { %v5101_v35 = vld [vmem:[#allocation7 + $0x108] ss:$16 sps:$4 sm:$0xff]   ;;  %v5102_v36 = vld [vmem:[#allocation7 + $0x124] ss:$16 sps:$4 sm:$0xff]   ;;  %v5104_v37 = vld [vmem:[#allocation7 + $0x12c] ss:$16 sps:$4 sm:$0xff]  }
  0x7b   :  { %v5106_v38 = vld [vmem:[#allocation7 + $0x120] ss:$16 sps:$4 sm:$0xff]   ;;  %v5107_v39 = vld [vmem:[#allocation7 + $0x128] ss:$16 sps:$4 sm:$0xff]   ;;  %v5108_v40 = vld [vmem:[#allocation7 + $0x144] ss:$16 sps:$4 sm:$0xff]  }
  0x7c   :  { %1518 = vmatpush1.bf16.msra.mxu0 %v5070_v14  ;;  %1682 = vmatpush1.bf16.msra.mxu1 %v5071_v15  ;;  %v5110_v41 = vld [vmem:[#allocation7 + $0x14c] ss:$16 sps:$4 sm:$0xff]   ;;  %v5112_v42 = vld [vmem:[#allocation7 + $0x140] ss:$16 sps:$4 sm:$0xff]   ;;  %v5113_v43 = vld [vmem:[#allocation7 + $0x148] ss:$16 sps:$4 sm:$0xff]  }
  0x7d   :  { %1519 = vmatprep.subr.bf16.mxu0 %v5072_v16  ;;  %1683 = vmatprep.subr.bf16.mxu1 %v5074_v17  ;;  %v5114_v44 = vld [vmem:[#allocation7 + $0x164] ss:$16 sps:$4 sm:$0xff]   ;;  %v5116_v45 = vld [vmem:[#allocation7 + $0x16c] ss:$16 sps:$4 sm:$0xff]   ;;  %v5118_v47 = vld [vmem:[#allocation7 + $0x160] ss:$16 sps:$4 sm:$0xff]  }
  0x7e   :  { %v115_v46 = vld [vmem:[#allocation2] sm:$0xff]  ;;  %v5119_v49 = vld [vmem:[#allocation7 + $0x168] ss:$16 sps:$4 sm:$0xff]   ;;  %v5120_v50 = vld [vmem:[#allocation7 + $0x184] ss:$16 sps:$4 sm:$0xff]   ;;  %vm2397_vm0 = vcmask 1041408  }
  0x7f   :  { %v4406_v48 = vcombine.high %v115_v46, %v115_v46  ;;  %v5122_v51 = vld [vmem:[#allocation7 + $0x18c] ss:$16 sps:$4 sm:$0xff]   ;;  %v5124_v52 = vld [vmem:[#allocation7 + $0x180] ss:$16 sps:$4 sm:$0xff]   ;;  %v5125_v53 = vld [vmem:[#allocation7 + $0x188] ss:$16 sps:$4 sm:$0xff]   ;;  %v4405_v5 = vcombine.low %v115_v46, %v115_v46 }
  0x80   :  { %1520 = vmatpush1.bf16.msra.mxu0 %v5076_v18  ;;  %1684 = vmatpush1.bf16.msra.mxu1 %v5077_v19  ;;  %v5126_v54 = vld [vmem:[#allocation7 + $0x1a4] ss:$16 sps:$4 sm:$0xff]   ;;  %v5128_v55 = vld [vmem:[#allocation7 + $0x1ac] ss:$16 sps:$4 sm:$0xff]   ;;  %v5130_v56 = vld [vmem:[#allocation7 + $0x1a0] ss:$16 sps:$4 sm:$0xff]  }
  0x81   :  { %1521 = vmatprep.subr.bf16.mxu0 %v5078_v20  ;;  %1685 = vmatprep.subr.bf16.mxu1 %v5080_v21  ;;  %v5131_v57 = vld [vmem:[#allocation7 + $0x1a8] ss:$16 sps:$4 sm:$0xff]   ;;  %v5132_v58 = vld [vmem:[#allocation7 + $0x1c4] ss:$16 sps:$4 sm:$0xff]   ;;  %v5134_v59 = vld [vmem:[#allocation7 + $0x1cc] ss:$16 sps:$4 sm:$0xff]  }
  0x82   :  { %1543 = vmatprep.mubr.bf16.mxu0 %v4406_v48  ;;  %1707 = vmatprep.mubr.bf16.mxu1 %v4406_v48  ;;  %v5136_v60 = vld [vmem:[#allocation7 + $0x1c0] ss:$16 sps:$4 sm:$0xff]   ;;  %v5137_v61 = vld [vmem:[#allocation7 + $0x1c8] ss:$16 sps:$4 sm:$0xff]   ;;  %v5138_v62 = vld [vmem:[#allocation7 + $0x1e4] ss:$16 sps:$4 sm:$0xff]  }
  0x83   :  { %v5140_v63 = vld [vmem:[#allocation7 + $0x1ec] ss:$16 sps:$4 sm:$0xff]   ;;  %v5142_v0 = vld [vmem:[#allocation7 + $0x1e0] ss:$16 sps:$4 sm:$0xff]   ;;  %v5143_v1 = vld [vmem:[#allocation7 + $0x1e8] ss:$16 sps:$4 sm:$0xff]  }
  0x84   :  { %1522 = vmatpush1.bf16.msra.mxu0 %v5082_v22  ;;  %1686 = vmatpush1.bf16.msra.mxu1 %v5083_v23  ;;  %v5147_v2 = vld [vmem:[#allocation7 + $0x204] ss:$16 sps:$4 sm:$0xff]   ;;  %v5150_v3 = vld [vmem:[#allocation7 + $0x20c] ss:$16 sps:$4 sm:$0xff]   ;;  %v5145_v4 = vld [vmem:[#allocation7 + $0x200] ss:$16 sps:$4 sm:$0xff]  }
  0x85   :  { %1523 = vmatprep.subr.bf16.mxu0 %v5084_v24  ;;  %1687 = vmatprep.subr.bf16.mxu1 %v5086_v25  ;;  %v5148_v6 = vld [vmem:[#allocation7 + $0x208] ss:$16 sps:$4 sm:$0xff]   ;;  %v5154_v7 = vld [vmem:[#allocation7 + $0x224] ss:$16 sps:$4 sm:$0xff]   ;;  %v5157_v8 = vld [vmem:[#allocation7 + $0x22c] ss:$16 sps:$4 sm:$0xff]  }
  0x86   :  { %v5152_v9 = vld [vmem:[#allocation7 + $0x220] ss:$16 sps:$4 sm:$0xff]   ;;  %v5155_v10 = vld [vmem:[#allocation7 + $0x228] ss:$16 sps:$4 sm:$0xff]   ;;  %v5160_v11 = vld [vmem:[#allocation7 + $0x244] ss:$16 sps:$4 sm:$0xff]  }
  0x87   :  { %v5163_v12 = vld [vmem:[#allocation7 + $0x24c] ss:$16 sps:$4 sm:$0xff]   ;;  %v5158_v13 = vld [vmem:[#allocation7 + $0x240] ss:$16 sps:$4 sm:$0xff]   ;;  %v5161_v14 = vld [vmem:[#allocation7 + $0x248] ss:$16 sps:$4 sm:$0xff]  }
  0x88   :  { %1524 = vmatpush1.bf16.msra.mxu0 %v5088_v26  ;;  %1688 = vmatpush1.bf16.msra.mxu1 %v5089_v27  ;;  %v5166_v15 = vld [vmem:[#allocation7 + $0x264] ss:$16 sps:$4 sm:$0xff]   ;;  %v5169_v16 = vld [vmem:[#allocation7 + $0x26c] ss:$16 sps:$4 sm:$0xff]   ;;  %v5164_v17 = vld [vmem:[#allocation7 + $0x260] ss:$16 sps:$4 sm:$0xff]  }
  0x89   :  { %1525 = vmatprep.subr.bf16.mxu0 %v5090_v28  ;;  %1689 = vmatprep.subr.bf16.mxu1 %v5092_v29  ;;  %v5167_v18 = vld [vmem:[#allocation7 + $0x268] ss:$16 sps:$4 sm:$0xff]   ;;  %v5172_v19 = vld [vmem:[#allocation7 + $0x284] ss:$16 sps:$4 sm:$0xff]   ;;  %v5175_v20 = vld [vmem:[#allocation7 + $0x28c] ss:$16 sps:$4 sm:$0xff]  }
  0x8a   :  { %v5170_v21 = vld [vmem:[#allocation7 + $0x280] ss:$16 sps:$4 sm:$0xff]   ;;  %v5173_v22 = vld [vmem:[#allocation7 + $0x288] ss:$16 sps:$4 sm:$0xff]   ;;  %v5178_v23 = vld [vmem:[#allocation7 + $0x2a4] ss:$16 sps:$4 sm:$0xff]  }
  0x8b   :  { %v5181_v24 = vld [vmem:[#allocation7 + $0x2ac] ss:$16 sps:$4 sm:$0xff]   ;;  %v5176_v25 = vld [vmem:[#allocation7 + $0x2a0] ss:$16 sps:$4 sm:$0xff]   ;;  %v5179_v26 = vld [vmem:[#allocation7 + $0x2a8] ss:$16 sps:$4 sm:$0xff]  }
  0x8c   :  { %1526 = vmatpush1.bf16.msra.mxu0 %v5094_v30  ;;  %1690 = vmatpush1.bf16.msra.mxu1 %v5095_v31  ;;  %v5184_v27 = vld [vmem:[#allocation7 + $0x2c4] ss:$16 sps:$4 sm:$0xff]   ;;  %v5187_v28 = vld [vmem:[#allocation7 + $0x2cc] ss:$16 sps:$4 sm:$0xff]   ;;  %v5182_v31 = vld [vmem:[#allocation7 + $0x2c0] ss:$16 sps:$4 sm:$0xff]  }
  0x8d   :  { %1527 = vmatprep.subr.bf16.mxu0 %v5096_v32  ;;  %1691 = vmatprep.subr.bf16.mxu1 %v5098_v33  ;;  %v6167_v29 = vld [vmem:[#allocation2 + $0x8] sm:$0xff]  ;;  %v5211_v46 = vld [vmem:[#allocation7 + $0x34c] ss:$16 sps:$4 sm:$0xff]   ;;  %vm2393_vm3 = vcmask 162816   ;;  %vm4375_vm4 = vcmask 7168   ;;  %s5985_s4 = scalar_lea.hbm %s6303_s10, 16 }
  0x8e   :  { %v4408_v30 = vcombine.high %v6167_v29, %v6167_v29  ;;  %v5185_v32 = vld [vmem:[#allocation7 + $0x2c8] ss:$16 sps:$4 sm:$0xff]   ;;  %v5190_v33 = vld [vmem:[#allocation7 + $0x2e4] ss:$16 sps:$4 sm:$0xff]   ;;  %p5986_p6 = scmp.ne.s32.totalorder %s6303_s10, %s5985_s4  ;;  %p5989_p7 = scmp.lt.u32.totalorder %s5985_s4, %s6303_s10 }
  0x8f   :  { %v5209_v48 = vld [vmem:[#allocation7 + $0x348] ss:$16 sps:$4 sm:$0xff]  }
  0x90   :  { %1528 = vmatpush1.bf16.msra.mxu0 %v5100_v34  ;;  %1692 = vmatpush1.bf16.msra.mxu1 %v5101_v35  ;;  %v5193_v34 = vld [vmem:[#allocation7 + $0x2ec] ss:$16 sps:$4 sm:$0xff]   ;;  %v5188_v35 = vld [vmem:[#allocation7 + $0x2e0] ss:$16 sps:$4 sm:$0xff]   ;;  %p5991_p8 = pnand %p5989_p7, %p5986_p6 }
  0x91   :  { %1529 = vmatprep.subr.bf16.mxu0 %v5102_v36  ;;  %1693 = vmatprep.subr.bf16.mxu1 %v5104_v37  ;;  %v5191_v36 = vld [vmem:[#allocation7 + $0x2e8] ss:$16 sps:$4 sm:$0xff]   ;;  %v5196_v37 = vld [vmem:[#allocation7 + $0x304] ss:$16 sps:$4 sm:$0xff]  }
  0x94   :  { %1530 = vmatpush1.bf16.msra.mxu0 %v5106_v38  ;;  %1694 = vmatpush1.bf16.msra.mxu1 %v5107_v39  ;;  %v5199_v38 = vld [vmem:[#allocation7 + $0x30c] ss:$16 sps:$4 sm:$0xff]   ;;  %v5194_v39 = vld [vmem:[#allocation7 + $0x300] ss:$16 sps:$4 sm:$0xff]  }
  0x95   :  { %1531 = vmatprep.subr.bf16.mxu0 %v5108_v40  ;;  %1695 = vmatprep.subr.bf16.mxu1 %v5110_v41  ;;  %v5197_v40 = vld [vmem:[#allocation7 + $0x308] ss:$16 sps:$4 sm:$0xff]   ;;  %v5202_v41 = vld [vmem:[#allocation7 + $0x324] ss:$16 sps:$4 sm:$0xff]  }
  0x98   :  { %1532 = vmatpush1.bf16.msra.mxu0 %v5112_v42  ;;  %1696 = vmatpush1.bf16.msra.mxu1 %v5113_v43  ;;  %v5205_v42 = vld [vmem:[#allocation7 + $0x32c] ss:$16 sps:$4 sm:$0xff]   ;;  %v5200_v43 = vld [vmem:[#allocation7 + $0x320] ss:$16 sps:$4 sm:$0xff]  }
  0x99   :  { %1533 = vmatprep.subr.bf16.mxu0 %v5114_v44  ;;  %1697 = vmatprep.subr.bf16.mxu1 %v5116_v45  ;;  %v5203_v44 = vld [vmem:[#allocation7 + $0x328] ss:$16 sps:$4 sm:$0xff]   ;;  %v5208_v45 = vld [vmem:[#allocation7 + $0x344] ss:$16 sps:$4 sm:$0xff]  }
  0x9c   :  { %1534 = vmatpush1.bf16.msra.mxu0 %v5118_v47  ;;  %1698 = vmatpush1.bf16.msra.mxu1 %v5119_v49  ;;  %v5206_v47 = vld [vmem:[#allocation7 + $0x340] ss:$16 sps:$4 sm:$0xff]   ;;  %v5214_v49 = vld [vmem:[#allocation7 + $0x364] ss:$16 sps:$4 sm:$0xff]  }
  0x9d   :  { %1535 = vmatprep.subr.bf16.mxu0 %v5120_v50  ;;  %1699 = vmatprep.subr.bf16.mxu1 %v5122_v51  ;;  %v5217_v50 = vld [vmem:[#allocation7 + $0x36c] ss:$16 sps:$4 sm:$0xff]   ;;  %v5212_v51 = vld [vmem:[#allocation7 + $0x360] ss:$16 sps:$4 sm:$0xff]  }
  0xa0   :  { %1536 = vmatpush1.bf16.msra.mxu0 %v5124_v52  ;;  %1700 = vmatpush1.bf16.msra.mxu1 %v5125_v53  ;;  %v5215_v52 = vld [vmem:[#allocation7 + $0x368] ss:$16 sps:$4 sm:$0xff]   ;;  %v5220_v53 = vld [vmem:[#allocation7 + $0x384] ss:$16 sps:$4 sm:$0xff]  }
  0xa1   :  { %1537 = vmatprep.subr.bf16.mxu0 %v5126_v54  ;;  %1701 = vmatprep.subr.bf16.mxu1 %v5128_v55  ;;  %v5223_v54 = vld [vmem:[#allocation7 + $0x38c] ss:$16 sps:$4 sm:$0xff]   ;;  %v5218_v55 = vld [vmem:[#allocation7 + $0x380] ss:$16 sps:$4 sm:$0xff]  }
  0xa4   :  { %1538 = vmatpush1.bf16.msra.mxu0 %v5130_v56  ;;  %1702 = vmatpush1.bf16.msra.mxu1 %v5131_v57  ;;  %v5221_v56 = vld [vmem:[#allocation7 + $0x388] ss:$16 sps:$4 sm:$0xff]   ;;  %v5226_v57 = vld [vmem:[#allocation7 + $0x3a4] ss:$16 sps:$4 sm:$0xff]  }
  0xa5   :  { %1539 = vmatprep.subr.bf16.mxu0 %v5132_v58  ;;  %1703 = vmatprep.subr.bf16.mxu1 %v5134_v59  ;;  %v5229_v58 = vld [vmem:[#allocation7 + $0x3ac] ss:$16 sps:$4 sm:$0xff]   ;;  %v5224_v59 = vld [vmem:[#allocation7 + $0x3a0] ss:$16 sps:$4 sm:$0xff]  }
  0xa8   :  { %1540 = vmatpush1.bf16.msra.mxu0 %v5136_v60  ;;  %1704 = vmatpush1.bf16.msra.mxu1 %v5137_v61  ;;  %v5227_v60 = vld [vmem:[#allocation7 + $0x3a8] ss:$16 sps:$4 sm:$0xff]   ;;  %v5232_v61 = vld [vmem:[#allocation7 + $0x3c4] ss:$16 sps:$4 sm:$0xff]  }
  0xa9   :  { %1541 = vmatprep.subr.bf16.mxu0 %v5138_v62  ;;  %1705 = vmatprep.subr.bf16.mxu1 %v5140_v63  ;;  %v5235_v62 = vld [vmem:[#allocation7 + $0x3cc] ss:$16 sps:$4 sm:$0xff]   ;;  %v5230_v63 = vld [vmem:[#allocation7 + $0x3c0] ss:$16 sps:$4 sm:$0xff]  }
  0xac   :  { %1542 = vmatpush1.bf16.msra.mxu0 %v5142_v0  ;;  %1706 = vmatpush1.bf16.msra.mxu1 %v5143_v1  ;;  %v5233_v0 = vld [vmem:[#allocation7 + $0x3c8] ss:$16 sps:$4 sm:$0xff]   ;;  %v5238_v1 = vld [vmem:[#allocation7 + $0x3e4] ss:$16 sps:$4 sm:$0xff]  }
  0xad   :  { %1552 = vmatprep.subr.bf16.mxu0 %v5147_v2  ;;  %1716 = vmatprep.subr.bf16.mxu1 %v5150_v3  ;;  %v5241_v2 = vld [vmem:[#allocation7 + $0x3ec] ss:$16 sps:$4 sm:$0xff]   ;;  %v5236_v3 = vld [vmem:[#allocation7 + $0x3e0] ss:$16 sps:$4 sm:$0xff]  }
  0xaf   :  { %1544 = vmatmul.mubr.bf16.vlgmr.msra.gmra.mrb[0].mxu0 %v4405_v5  ;;  %1708 = vmatmul.mubr.bf16.vlgmr.msra.gmra.mrb[0].mxu1 %v4405_v5  ;;  %v5245_v5 = vld [vmem:[#allocation7 + $0x404] ss:$16 sps:$4 sm:$0xff]  }
  0xb0   :  { %1553 = vmatpush1.bf16.msra.mxu0 %v5145_v4  ;;  %1717 = vmatpush1.bf16.msra.mxu1 %v5148_v6  ;;  %v5239_v4 = vld [vmem:[#allocation7 + $0x3e8] ss:$16 sps:$4 sm:$0xff]   ;;  %v5248_v6 = vld [vmem:[#allocation7 + $0x40c] ss:$16 sps:$4 sm:$0xff]  }
  0xb1   :  { %1554 = vmatprep.subr.bf16.mxu0 %v5154_v7  ;;  %1718 = vmatprep.subr.bf16.mxu1 %v5157_v8  ;;  %v5243_v7 = vld [vmem:[#allocation7 + $0x400] ss:$16 sps:$4 sm:$0xff]   ;;  %v4407_v8 = vcombine.low %v6167_v29, %v6167_v29  ;;  %v5279_v29 = vld [vmem:[#allocation7 + $0x4ac] ss:$16 sps:$4 sm:$0xff]  }
  0xb2   :  { %1584 = vmatprep.mubr.bf16.mxu0 %v4408_v30  ;;  %1748 = vmatprep.mubr.bf16.mxu1 %v4408_v30  ;;  %v5274_v30 = vld [vmem:[#allocation7 + $0x4a0] ss:$16 sps:$4 sm:$0xff]  }
  0xb4   :  { %1555 = vmatpush1.bf16.msra.mxu0 %v5152_v9  ;;  %1719 = vmatpush1.bf16.msra.mxu1 %v5155_v10  ;;  %v5246_v9 = vld [vmem:[#allocation7 + $0x408] ss:$16 sps:$4 sm:$0xff]   ;;  %v5252_v10 = vld [vmem:[#allocation7 + $0x424] ss:$16 sps:$4 sm:$0xff]  }
  0xb5   :  { %1556 = vmatprep.subr.bf16.mxu0 %v5160_v11  ;;  %1720 = vmatprep.subr.bf16.mxu1 %v5163_v12  ;;  %v6173_v11 = vld [vmem:[#allocation2 + $0x10] sm:$0xff] }
  0xb6   :  { %v5255_v12 = vld [vmem:[#allocation7 + $0x42c] ss:$16 sps:$4 sm:$0xff]  }
  0xb8   :  { %1557 = vmatpush1.bf16.msra.mxu0 %v5158_v13  ;;  %1721 = vmatpush1.bf16.msra.mxu1 %v5161_v14  ;;  %v4410_v13 = vcombine.high %v6173_v11, %v6173_v11  ;;  %v5250_v14 = vld [vmem:[#allocation7 + $0x420] ss:$16 sps:$4 sm:$0xff]  }
  0xb9   :  { %1558 = vmatprep.subr.bf16.mxu0 %v5166_v15  ;;  %1722 = vmatprep.subr.bf16.mxu1 %v5169_v16  ;;  %v5253_v15 = vld [vmem:[#allocation7 + $0x428] ss:$16 sps:$4 sm:$0xff]   ;;  %v5258_v16 = vld [vmem:[#allocation7 + $0x444] ss:$16 sps:$4 sm:$0xff]  }
  0xbc   :  { %1559 = vmatpush1.bf16.msra.mxu0 %v5164_v17  ;;  %1723 = vmatpush1.bf16.msra.mxu1 %v5167_v18  ;;  %v5261_v17 = vld [vmem:[#allocation7 + $0x44c] ss:$16 sps:$4 sm:$0xff]   ;;  %v5256_v18 = vld [vmem:[#allocation7 + $0x440] ss:$16 sps:$4 sm:$0xff]  }
  0xbd   :  { %1560 = vmatprep.subr.bf16.mxu0 %v5172_v19  ;;  %1724 = vmatprep.subr.bf16.mxu1 %v5175_v20  ;;  %v5259_v19 = vld [vmem:[#allocation7 + $0x448] ss:$16 sps:$4 sm:$0xff]   ;;  %v5264_v20 = vld [vmem:[#allocation7 + $0x464] ss:$16 sps:$4 sm:$0xff]  }
  0xc0   :  { %1561 = vmatpush1.bf16.msra.mxu0 %v5170_v21  ;;  %1725 = vmatpush1.bf16.msra.mxu1 %v5173_v22  ;;  %v5267_v21 = vld [vmem:[#allocation7 + $0x46c] ss:$16 sps:$4 sm:$0xff]   ;;  %v5262_v22 = vld [vmem:[#allocation7 + $0x460] ss:$16 sps:$4 sm:$0xff]  }
  0xc1   :  { %1562 = vmatprep.subr.bf16.mxu0 %v5178_v23  ;;  %1726 = vmatprep.subr.bf16.mxu1 %v5181_v24  ;;  %v5265_v23 = vld [vmem:[#allocation7 + $0x468] ss:$16 sps:$4 sm:$0xff]   ;;  %v5270_v24 = vld [vmem:[#allocation7 + $0x484] ss:$16 sps:$4 sm:$0xff]  }
  0xc4   :  { %1563 = vmatpush1.bf16.msra.mxu0 %v5176_v25  ;;  %1727 = vmatpush1.bf16.msra.mxu1 %v5179_v26  ;;  %v5273_v25 = vld [vmem:[#allocation7 + $0x48c] ss:$16 sps:$4 sm:$0xff]   ;;  %v5268_v26 = vld [vmem:[#allocation7 + $0x480] ss:$16 sps:$4 sm:$0xff]  }
  0xc5   :  { %1564 = vmatprep.subr.bf16.mxu0 %v5184_v27  ;;  %1728 = vmatprep.subr.bf16.mxu1 %v5187_v28  ;;  %v5271_v27 = vld [vmem:[#allocation7 + $0x488] ss:$16 sps:$4 sm:$0xff]   ;;  %v5276_v28 = vld [vmem:[#allocation7 + $0x4a4] ss:$16 sps:$4 sm:$0xff]  }
  0xc8   :  { %1565 = vmatpush1.bf16.msra.mxu0 %v5182_v31  ;;  %1729 = vmatpush1.bf16.msra.mxu1 %v5185_v32  ;;  %v5277_v31 = vld [vmem:[#allocation7 + $0x4a8] ss:$16 sps:$4 sm:$0xff]   ;;  %v5282_v32 = vld [vmem:[#allocation7 + $0x4c4] ss:$16 sps:$4 sm:$0xff]  }
  0xc9   :  { %1566 = vmatprep.subr.bf16.mxu0 %v5190_v33  ;;  %1730 = vmatprep.subr.bf16.mxu1 %v5193_v34  ;;  %v5285_v33 = vld [vmem:[#allocation7 + $0x4cc] ss:$16 sps:$4 sm:$0xff]   ;;  %v5280_v34 = vld [vmem:[#allocation7 + $0x4c0] ss:$16 sps:$4 sm:$0xff]  }
  0xcc   :  { %1567 = vmatpush1.bf16.msra.mxu0 %v5188_v35  ;;  %1731 = vmatpush1.bf16.msra.mxu1 %v5191_v36  ;;  %v5283_v35 = vld [vmem:[#allocation7 + $0x4c8] ss:$16 sps:$4 sm:$0xff]   ;;  %v5288_v36 = vld [vmem:[#allocation7 + $0x4e4] ss:$16 sps:$4 sm:$0xff]  }
  0xcd   :  { %1568 = vmatprep.subr.bf16.mxu0 %v5196_v37  ;;  %1732 = vmatprep.subr.bf16.mxu1 %v5199_v38  ;;  %v5291_v37 = vld [vmem:[#allocation7 + $0x4ec] ss:$16 sps:$4 sm:$0xff]   ;;  %v5286_v38 = vld [vmem:[#allocation7 + $0x4e0] ss:$16 sps:$4 sm:$0xff]  }
  0xd0   :  { %1569 = vmatpush1.bf16.msra.mxu0 %v5194_v39  ;;  %1733 = vmatpush1.bf16.msra.mxu1 %v5197_v40  ;;  %v5289_v39 = vld [vmem:[#allocation7 + $0x4e8] ss:$16 sps:$4 sm:$0xff]   ;;  %v5294_v40 = vld [vmem:[#allocation7 + $0x504] ss:$16 sps:$4 sm:$0xff]  }
  0xd1   :  { %1570 = vmatprep.subr.bf16.mxu0 %v5202_v41  ;;  %1734 = vmatprep.subr.bf16.mxu1 %v5205_v42  ;;  %v5297_v41 = vld [vmem:[#allocation7 + $0x50c] ss:$16 sps:$4 sm:$0xff]   ;;  %v5292_v42 = vld [vmem:[#allocation7 + $0x500] ss:$16 sps:$4 sm:$0xff]  }
  0xd4   :  { %1571 = vmatpush1.bf16.msra.mxu0 %v5200_v43  ;;  %1735 = vmatpush1.bf16.msra.mxu1 %v5203_v44  ;;  %v5295_v43 = vld [vmem:[#allocation7 + $0x508] ss:$16 sps:$4 sm:$0xff]   ;;  %v5300_v44 = vld [vmem:[#allocation7 + $0x524] ss:$16 sps:$4 sm:$0xff]  }
  0xd5   :  { %1572 = vmatprep.subr.bf16.mxu0 %v5208_v45  ;;  %1736 = vmatprep.subr.bf16.mxu1 %v5211_v46  ;;  %v5303_v45 = vld [vmem:[#allocation7 + $0x52c] ss:$16 sps:$4 sm:$0xff]   ;;  %v5298_v46 = vld [vmem:[#allocation7 + $0x520] ss:$16 sps:$4 sm:$0xff]  }
  0xd8   :  { %1573 = vmatpush1.bf16.msra.mxu0 %v5206_v47  ;;  %1737 = vmatpush1.bf16.msra.mxu1 %v5209_v48  ;;  %v5301_v47 = vld [vmem:[#allocation7 + $0x528] ss:$16 sps:$4 sm:$0xff]   ;;  %v5306_v48 = vld [vmem:[#allocation7 + $0x544] ss:$16 sps:$4 sm:$0xff]  }
  0xd9   :  { %1574 = vmatprep.subr.bf16.mxu0 %v5214_v49  ;;  %1738 = vmatprep.subr.bf16.mxu1 %v5217_v50  ;;  %v5309_v49 = vld [vmem:[#allocation7 + $0x54c] ss:$16 sps:$4 sm:$0xff]   ;;  %v5304_v50 = vld [vmem:[#allocation7 + $0x540] ss:$16 sps:$4 sm:$0xff]  }
  0xdc   :  { %1575 = vmatpush1.bf16.msra.mxu0 %v5212_v51  ;;  %1739 = vmatpush1.bf16.msra.mxu1 %v5215_v52  ;;  %v5307_v51 = vld [vmem:[#allocation7 + $0x548] ss:$16 sps:$4 sm:$0xff]   ;;  %v5312_v52 = vld [vmem:[#allocation7 + $0x564] ss:$16 sps:$4 sm:$0xff]  }
  0xdd   :  { %1576 = vmatprep.subr.bf16.mxu0 %v5220_v53  ;;  %1740 = vmatprep.subr.bf16.mxu1 %v5223_v54  ;;  %v5315_v53 = vld [vmem:[#allocation7 + $0x56c] ss:$16 sps:$4 sm:$0xff]   ;;  %v5310_v54 = vld [vmem:[#allocation7 + $0x560] ss:$16 sps:$4 sm:$0xff]  }
  0xe0   :  { %1577 = vmatpush1.bf16.msra.mxu0 %v5218_v55  ;;  %1741 = vmatpush1.bf16.msra.mxu1 %v5221_v56  ;;  %v5313_v55 = vld [vmem:[#allocation7 + $0x568] ss:$16 sps:$4 sm:$0xff]   ;;  %v5318_v56 = vld [vmem:[#allocation7 + $0x584] ss:$16 sps:$4 sm:$0xff]  }
  0xe1   :  { %1578 = vmatprep.subr.bf16.mxu0 %v5226_v57  ;;  %1742 = vmatprep.subr.bf16.mxu1 %v5229_v58  ;;  %v5321_v57 = vld [vmem:[#allocation7 + $0x58c] ss:$16 sps:$4 sm:$0xff]   ;;  %v5316_v58 = vld [vmem:[#allocation7 + $0x580] ss:$16 sps:$4 sm:$0xff]  }
  0xe4   :  { %1579 = vmatpush1.bf16.msra.mxu0 %v5224_v59  ;;  %1743 = vmatpush1.bf16.msra.mxu1 %v5227_v60  ;;  %v5319_v59 = vld [vmem:[#allocation7 + $0x588] ss:$16 sps:$4 sm:$0xff]   ;;  %v5324_v60 = vld [vmem:[#allocation7 + $0x5a4] ss:$16 sps:$4 sm:$0xff]  }
  0xe5   :  { %1580 = vmatprep.subr.bf16.mxu0 %v5232_v61  ;;  %1744 = vmatprep.subr.bf16.mxu1 %v5235_v62  ;;  %v5327_v61 = vld [vmem:[#allocation7 + $0x5ac] ss:$16 sps:$4 sm:$0xff]   ;;  %v5322_v62 = vld [vmem:[#allocation7 + $0x5a0] ss:$16 sps:$4 sm:$0xff]  }
  0xe8   :  { %1581 = vmatpush1.bf16.msra.mxu0 %v5230_v63  ;;  %1745 = vmatpush1.bf16.msra.mxu1 %v5233_v0  ;;  %v5325_v63 = vld [vmem:[#allocation7 + $0x5a8] ss:$16 sps:$4 sm:$0xff]   ;;  %v5330_v0 = vld [vmem:[#allocation7 + $0x5c4] ss:$16 sps:$4 sm:$0xff]  }
  0xe9   :  { %1582 = vmatprep.subr.bf16.mxu0 %v5238_v1  ;;  %1746 = vmatprep.subr.bf16.mxu1 %v5241_v2  ;;  %v5333_v1 = vld [vmem:[#allocation7 + $0x5cc] ss:$16 sps:$4 sm:$0xff]   ;;  %v5328_v2 = vld [vmem:[#allocation7 + $0x5c0] ss:$16 sps:$4 sm:$0xff]  }
  0xec   :  { %1583 = vmatpush1.bf16.msra.mxu0 %v5236_v3  ;;  %1747 = vmatpush1.bf16.msra.mxu1 %v5239_v4  ;;  %v5331_v3 = vld [vmem:[#allocation7 + $0x5c8] ss:$16 sps:$4 sm:$0xff]   ;;  %v5336_v4 = vld [vmem:[#allocation7 + $0x5e4] ss:$16 sps:$4 sm:$0xff]  }
  0xed   :  { %1593 = vmatprep.subr.bf16.mxu0 %v5245_v5  ;;  %1757 = vmatprep.subr.bf16.mxu1 %v5248_v6  ;;  %v5339_v5 = vld [vmem:[#allocation7 + $0x5ec] ss:$16 sps:$4 sm:$0xff]   ;;  %v5334_v6 = vld [vmem:[#allocation7 + $0x5e0] ss:$16 sps:$4 sm:$0xff]  }
  0xef   :  { %1585 = vmatmul.mubr.bf16.vlgmr.msra.gmra.mrb[0].mxu0 %v4407_v8  ;;  %1749 = vmatmul.mubr.bf16.vlgmr.msra.gmra.mrb[0].mxu1 %v4407_v8  ;;  %v5343_v8 = vld [vmem:[#allocation7 + $0x604] ss:$16 sps:$4 sm:$0xff]  }
  0xf0   :  { %1594 = vmatpush1.bf16.msra.mxu0 %v5243_v7  ;;  %1758 = vmatpush1.bf16.msra.mxu1 %v5246_v9  ;;  %v5337_v7 = vld [vmem:[#allocation7 + $0x5e8] ss:$16 sps:$4 sm:$0xff]   ;;  %v5346_v9 = vld [vmem:[#allocation7 + $0x60c] ss:$16 sps:$4 sm:$0xff]  }
  0xf1   :  { %1595 = vmatprep.subr.bf16.mxu0 %v5252_v10  ;;  %1759 = vmatprep.subr.bf16.mxu1 %v5255_v12  ;;  %v5341_v10 = vld [vmem:[#allocation7 + $0x600] ss:$16 sps:$4 sm:$0xff]   ;;  %v5344_v12 = vld [vmem:[#allocation7 + $0x608] ss:$16 sps:$4 sm:$0xff]  }
  0xf2   :  { %1625 = vmatprep.mubr.bf16.mxu0 %v4410_v13  ;;  %1789 = vmatprep.mubr.bf16.mxu1 %v4410_v13  ;;  %v4409_v13 = vcombine.low %v6173_v11, %v6173_v11  ;;  %v5362_v11 = vld [vmem:[#allocation7 + $0x664] ss:$16 sps:$4 sm:$0xff]  }
  0xf4   :  { %1596 = vmatpush1.bf16.msra.mxu0 %v5250_v14  ;;  %1760 = vmatpush1.bf16.msra.mxu1 %v5253_v15  ;;  %v5350_v14 = vld [vmem:[#allocation7 + $0x624] ss:$16 sps:$4 sm:$0xff]   ;;  %v5353_v15 = vld [vmem:[#allocation7 + $0x62c] ss:$16 sps:$4 sm:$0xff]  }
  0xf5   :  { %1597 = vmatprep.subr.bf16.mxu0 %v5258_v16  ;;  %1761 = vmatprep.subr.bf16.mxu1 %v5261_v17  ;;  %v5348_v16 = vld [vmem:[#allocation7 + $0x620] ss:$16 sps:$4 sm:$0xff]   ;;  %v5351_v17 = vld [vmem:[#allocation7 + $0x628] ss:$16 sps:$4 sm:$0xff]  }
  0xf8   :  { %1598 = vmatpush1.bf16.msra.mxu0 %v5256_v18  ;;  %1762 = vmatpush1.bf16.msra.mxu1 %v5259_v19  ;;  %v5356_v18 = vld [vmem:[#allocation7 + $0x644] ss:$16 sps:$4 sm:$0xff]   ;;  %v5359_v19 = vld [vmem:[#allocation7 + $0x64c] ss:$16 sps:$4 sm:$0xff]  }
  0xf9   :  { %1599 = vmatprep.subr.bf16.mxu0 %v5264_v20  ;;  %1763 = vmatprep.subr.bf16.mxu1 %v5267_v21  ;;  %v5354_v20 = vld [vmem:[#allocation7 + $0x640] ss:$16 sps:$4 sm:$0xff]   ;;  %v5357_v21 = vld [vmem:[#allocation7 + $0x648] ss:$16 sps:$4 sm:$0xff]  }
  0xfc   :  { %1600 = vmatpush1.bf16.msra.mxu0 %v5262_v22  ;;  %1764 = vmatpush1.bf16.msra.mxu1 %v5265_v23  ;;  %v6017_v22 = vmov 0   ;;  %v5365_v23 = vld [vmem:[#allocation7 + $0x66c] ss:$16 sps:$4 sm:$0xff]  }
  0xfd   :  { %1601 = vmatprep.subr.bf16.mxu0 %v5270_v24  ;;  %1765 = vmatprep.subr.bf16.mxu1 %v5273_v25  ;;  %v5360_v24 = vld [vmem:[#allocation7 + $0x660] ss:$16 sps:$4 sm:$0xff]   ;;  %v5363_v25 = vld [vmem:[#allocation7 + $0x668] ss:$16 sps:$4 sm:$0xff]  }
 0x100   :  { %1602 = vmatpush1.bf16.msra.mxu0 %v5268_v26  ;;  %1766 = vmatpush1.bf16.msra.mxu1 %v5271_v27  ;;  %v5368_v26 = vld [vmem:[#allocation7 + $0x684] ss:$16 sps:$4 sm:$0xff]   ;;  %v5371_v27 = vld [vmem:[#allocation7 + $0x68c] ss:$16 sps:$4 sm:$0xff]  }
 0x101   :  { %1603 = vmatprep.subr.bf16.mxu0 %v5276_v28  ;;  %1767 = vmatprep.subr.bf16.mxu1 %v5279_v29  ;;  %v5366_v28 = vld [vmem:[#allocation7 + $0x680] ss:$16 sps:$4 sm:$0xff]   ;;  %v5369_v29 = vld [vmem:[#allocation7 + $0x688] ss:$16 sps:$4 sm:$0xff]  }
 0x104   :  { %1604 = vmatpush1.bf16.msra.mxu0 %v5274_v30  ;;  %1768 = vmatpush1.bf16.msra.mxu1 %v5277_v31  ;;  %v5374_v30 = vld [vmem:[#allocation7 + $0x6a4] ss:$16 sps:$4 sm:$0xff]   ;;  %v5377_v31 = vld [vmem:[#allocation7 + $0x6ac] ss:$16 sps:$4 sm:$0xff]  }
 0x105   :  { %1605 = vmatprep.subr.bf16.mxu0 %v5282_v32  ;;  %1769 = vmatprep.subr.bf16.mxu1 %v5285_v33  ;;  %v5372_v32 = vld [vmem:[#allocation7 + $0x6a0] ss:$16 sps:$4 sm:$0xff]   ;;  %v5375_v33 = vld [vmem:[#allocation7 + $0x6a8] ss:$16 sps:$4 sm:$0xff]  }
 0x108   :  { %1606 = vmatpush1.bf16.msra.mxu0 %v5280_v34  ;;  %1770 = vmatpush1.bf16.msra.mxu1 %v5283_v35  ;;  %v5380_v34 = vld [vmem:[#allocation7 + $0x6c4] ss:$16 sps:$4 sm:$0xff]   ;;  %v5383_v35 = vld [vmem:[#allocation7 + $0x6cc] ss:$16 sps:$4 sm:$0xff]  }
 0x109   :  { %1607 = vmatprep.subr.bf16.mxu0 %v5288_v36  ;;  %1771 = vmatprep.subr.bf16.mxu1 %v5291_v37  ;;  %v5378_v36 = vld [vmem:[#allocation7 + $0x6c0] ss:$16 sps:$4 sm:$0xff]   ;;  %v5381_v37 = vld [vmem:[#allocation7 + $0x6c8] ss:$16 sps:$4 sm:$0xff]  }
 0x10c   :  { %1608 = vmatpush1.bf16.msra.mxu0 %v5286_v38  ;;  %1772 = vmatpush1.bf16.msra.mxu1 %v5289_v39  ;;  %v5386_v38 = vld [vmem:[#allocation7 + $0x6e4] ss:$16 sps:$4 sm:$0xff]   ;;  %v5389_v39 = vld [vmem:[#allocation7 + $0x6ec] ss:$16 sps:$4 sm:$0xff]  }
 0x10d   :  { %1609 = vmatprep.subr.bf16.mxu0 %v5294_v40  ;;  %1773 = vmatprep.subr.bf16.mxu1 %v5297_v41  ;;  %v5384_v40 = vld [vmem:[#allocation7 + $0x6e0] ss:$16 sps:$4 sm:$0xff]   ;;  %v5387_v41 = vld [vmem:[#allocation7 + $0x6e8] ss:$16 sps:$4 sm:$0xff]  }
 0x110   :  { %1610 = vmatpush1.bf16.msra.mxu0 %v5292_v42  ;;  %1774 = vmatpush1.bf16.msra.mxu1 %v5295_v43  ;;  %v118_v42 = vld [vmem:[#allocation2 + $0x18] sm:$0xf]  ;;  %v5393_v43 = vld [vmem:[#allocation8 + $0x4] ss:$8 sps:$4 sm:$0xff]  }
 0x111   :  { %1611 = vmatprep.subr.bf16.mxu0 %v5300_v44  ;;  %1775 = vmatprep.subr.bf16.mxu1 %v5303_v45  ;;  %v5391_v44 = vld [vmem:[#allocation8] ss:$8 sps:$4 sm:$0xff]   ;;  %v4411_v45 = vcombine.low %v118_v42, %v118_v42  ;;  %v5442_v42 = vld [vmem:[#allocation8 + $0x110] ss:$8 sps:$4 sm:$0xff]  }
 0x114   :  { %1612 = vmatpush1.bf16.msra.mxu0 %v5298_v46  ;;  %1776 = vmatpush1.bf16.msra.mxu1 %v5301_v47  ;;  %v5396_v46 = vld [vmem:[#allocation8 + $0x14] ss:$8 sps:$4 sm:$0xff]   ;;  %v5394_v47 = vld [vmem:[#allocation8 + $0x10] ss:$8 sps:$4 sm:$0xff]  }
 0x115   :  { %1613 = vmatprep.subr.bf16.mxu0 %v5306_v48  ;;  %1777 = vmatprep.subr.bf16.mxu1 %v5309_v49  ;;  %v5399_v48 = vld [vmem:[#allocation8 + $0x24] ss:$8 sps:$4 sm:$0xff]   ;;  %v5397_v49 = vld [vmem:[#allocation8 + $0x20] ss:$8 sps:$4 sm:$0xff]  }
 0x118   :  { %1614 = vmatpush1.bf16.msra.mxu0 %v5304_v50  ;;  %1778 = vmatpush1.bf16.msra.mxu1 %v5307_v51  ;;  %v5402_v50 = vld [vmem:[#allocation8 + $0x34] ss:$8 sps:$4 sm:$0xff]   ;;  %v5400_v51 = vld [vmem:[#allocation8 + $0x30] ss:$8 sps:$4 sm:$0xff]  }
 0x119   :  { %1615 = vmatprep.subr.bf16.mxu0 %v5312_v52  ;;  %1779 = vmatprep.subr.bf16.mxu1 %v5315_v53  ;;  %v5405_v52 = vld [vmem:[#allocation8 + $0x44] ss:$8 sps:$4 sm:$0xff]   ;;  %v5403_v53 = vld [vmem:[#allocation8 + $0x40] ss:$8 sps:$4 sm:$0xff]  }
 0x11c   :  { %1616 = vmatpush1.bf16.msra.mxu0 %v5310_v54  ;;  %1780 = vmatpush1.bf16.msra.mxu1 %v5313_v55  ;;  %v5408_v54 = vld [vmem:[#allocation8 + $0x54] ss:$8 sps:$4 sm:$0xff]   ;;  %v5406_v55 = vld [vmem:[#allocation8 + $0x50] ss:$8 sps:$4 sm:$0xff]  }
 0x11d   :  { %1617 = vmatprep.subr.bf16.mxu0 %v5318_v56  ;;  %1781 = vmatprep.subr.bf16.mxu1 %v5321_v57  ;;  %v5411_v56 = vld [vmem:[#allocation8 + $0x64] ss:$8 sps:$4 sm:$0xff]   ;;  %v5409_v57 = vld [vmem:[#allocation8 + $0x60] ss:$8 sps:$4 sm:$0xff]  }
 0x120   :  { %1618 = vmatpush1.bf16.msra.mxu0 %v5316_v58  ;;  %1782 = vmatpush1.bf16.msra.mxu1 %v5319_v59  ;;  %v5414_v58 = vld [vmem:[#allocation8 + $0x74] ss:$8 sps:$4 sm:$0xff]   ;;  %v5412_v59 = vld [vmem:[#allocation8 + $0x70] ss:$8 sps:$4 sm:$0xff]  }
 0x121   :  { %1619 = vmatprep.subr.bf16.mxu0 %v5324_v60  ;;  %1783 = vmatprep.subr.bf16.mxu1 %v5327_v61  ;;  %v5417_v60 = vld [vmem:[#allocation8 + $0x84] ss:$8 sps:$4 sm:$0xff]   ;;  %v5415_v61 = vld [vmem:[#allocation8 + $0x80] ss:$8 sps:$4 sm:$0xff]  }
 0x124   :  { %1620 = vmatpush1.bf16.msra.mxu0 %v5322_v62  ;;  %1784 = vmatpush1.bf16.msra.mxu1 %v5325_v63  ;;  %v5420_v62 = vld [vmem:[#allocation8 + $0x94] ss:$8 sps:$4 sm:$0xff]   ;;  %v5418_v63 = vld [vmem:[#allocation8 + $0x90] ss:$8 sps:$4 sm:$0xff]  }
 0x125   :  { %1621 = vmatprep.subr.bf16.mxu0 %v5330_v0  ;;  %1785 = vmatprep.subr.bf16.mxu1 %v5333_v1  ;;  %v5423_v0 = vld [vmem:[#allocation8 + $0xa4] ss:$8 sps:$4 sm:$0xff]   ;;  %v5421_v1 = vld [vmem:[#allocation8 + $0xa0] ss:$8 sps:$4 sm:$0xff]  }
 0x128   :  { %1622 = vmatpush1.bf16.msra.mxu0 %v5328_v2  ;;  %1786 = vmatpush1.bf16.msra.mxu1 %v5331_v3  ;;  %v5426_v2 = vld [vmem:[#allocation8 + $0xb4] ss:$8 sps:$4 sm:$0xff]   ;;  %v5424_v3 = vld [vmem:[#allocation8 + $0xb0] ss:$8 sps:$4 sm:$0xff]  }
 0x129   :  { %1623 = vmatprep.subr.bf16.mxu0 %v5336_v4  ;;  %1787 = vmatprep.subr.bf16.mxu1 %v5339_v5  ;;  %v5429_v4 = vld [vmem:[#allocation8 + $0xc4] ss:$8 sps:$4 sm:$0xff]   ;;  %v5427_v5 = vld [vmem:[#allocation8 + $0xc0] ss:$8 sps:$4 sm:$0xff]  }
 0x12c   :  { %1624 = vmatpush1.bf16.msra.mxu0 %v5334_v6  ;;  %1788 = vmatpush1.bf16.msra.mxu1 %v5337_v7  ;;  %v5432_v6 = vld [vmem:[#allocation8 + $0xd4] ss:$8 sps:$4 sm:$0xff]   ;;  %v5430_v7 = vld [vmem:[#allocation8 + $0xd0] ss:$8 sps:$4 sm:$0xff]  }
 0x12d   :  { %1634 = vmatprep.subr.bf16.mxu0 %v5343_v8  ;;  %1798 = vmatprep.subr.bf16.mxu1 %v5346_v9  ;;  %v5435_v8 = vld [vmem:[#allocation8 + $0xe4] ss:$8 sps:$4 sm:$0xff]   ;;  %v5433_v9 = vld [vmem:[#allocation8 + $0xe0] ss:$8 sps:$4 sm:$0xff]  }
 0x12f   :  { %1626 = vmatmul.mubr.bf16.vlgmr.msra.gmra.mrb[0].mxu0 %v4409_v13  ;;  %1790 = vmatmul.mubr.bf16.vlgmr.msra.gmra.mrb[0].mxu1 %v4409_v13  ;;  %v5441_v13 = vld [vmem:[#allocation8 + $0x104] ss:$8 sps:$4 sm:$0xff]  }
 0x130   :  { %1635 = vmatpush1.bf16.msra.mxu0 %v5341_v10  ;;  %1799 = vmatpush1.bf16.msra.mxu1 %v5344_v12  ;;  %v5438_v10 = vld [vmem:[#allocation8 + $0xf4] ss:$8 sps:$4 sm:$0xff]   ;;  %v5436_v12 = vld [vmem:[#allocation8 + $0xf0] ss:$8 sps:$4 sm:$0xff]  }
 0x131   :  { %1636 = vmatprep.subr.bf16.mxu0 %v5350_v14  ;;  %1800 = vmatprep.subr.bf16.mxu1 %v5353_v15  ;;  %v346_v14 = vlaneseq }
 0x132   :  { %1666 = vmatprep.mubr.bf16.mxu0 %v6017_v22  ;;  %1830 = vmatprep.mubr.bf16.mxu1 %v6017_v22 }
 0x133   :  { %v6182_v15 = vshrl.u32 %v346_v14, 7  ;;  %v5489_v14 = vld [vmem:[#allocation10 + $0x4] ss:$16 sps:$4 sm:$0xff]  }
 0x134   :  { %1637 = vmatpush1.bf16.msra.mxu0 %v5348_v16  ;;  %1801 = vmatpush1.bf16.msra.mxu1 %v5351_v17  ;;  %v6190_v17 = vld [vmem:[%s6296_s3] sm:$0xf] }
 0x135   :  { %1638 = vmatprep.subr.bf16.mxu0 %v5356_v18  ;;  %1802 = vmatprep.subr.bf16.mxu1 %v5359_v19  ;;  %v6185_v16 = vsub.s32 0, %v6182_v15  ;;  %v6193_v18 = vsub.s32 1, %v6182_v15  ;;  %v6196_v19 = vsub.s32 3, %v6182_v15 }
 0x138   :  { %1639 = vmatpush1.bf16.msra.mxu0 %v5354_v20  ;;  %1803 = vmatpush1.bf16.msra.mxu1 %v5357_v21  ;;  %v349_v20 = vrot.slane %v6190_v17, %v6185_v16  ;;  %v353_v21 = vrot.slane %v6190_v17, %v6193_v18 }
 0x139   :  { %1640 = vmatprep.subr.bf16.mxu0 %v5362_v11  ;;  %1804 = vmatprep.subr.bf16.mxu1 %v5365_v23  ;;  %v361_v11 = vrot.slane %v6190_v17, %v6196_v19 }
 0x13c   :  { %1641 = vmatpush1.bf16.msra.mxu0 %v5360_v24  ;;  %1805 = vmatpush1.bf16.msra.mxu1 %v5363_v25 }
 0x13d   :  { %1642 = vmatprep.subr.bf16.mxu0 %v5368_v26  ;;  %1806 = vmatprep.subr.bf16.mxu1 %v5371_v27 }
 0x140   :  { %1643 = vmatpush1.bf16.msra.mxu0 %v5366_v28  ;;  %1807 = vmatpush1.bf16.msra.mxu1 %v5369_v29 }
 0x141   :  { %1644 = vmatprep.subr.bf16.mxu0 %v5374_v30  ;;  %1808 = vmatprep.subr.bf16.mxu1 %v5377_v31 }
 0x144   :  { %1645 = vmatpush1.bf16.msra.mxu0 %v5372_v32  ;;  %1809 = vmatpush1.bf16.msra.mxu1 %v5375_v33 }
 0x145   :  { %1646 = vmatprep.subr.bf16.mxu0 %v5380_v34  ;;  %1810 = vmatprep.subr.bf16.mxu1 %v5383_v35 }
 0x148   :  { %1647 = vmatpush1.bf16.msra.mxu0 %v5378_v36  ;;  %1811 = vmatpush1.bf16.msra.mxu1 %v5381_v37 }
 0x149   :  { %1648 = vmatprep.subr.bf16.mxu0 %v5386_v38  ;;  %1812 = vmatprep.subr.bf16.mxu1 %v5389_v39  ;;  %v5439_v38 = vld [vmem:[#allocation8 + $0x100] ss:$8 sps:$4 sm:$0xff]  }
 0x14c   :  { %1649 = vmatpush1.bf16.msra.mxu0 %v5384_v40  ;;  %1813 = vmatpush1.bf16.msra.mxu1 %v5387_v41  ;;  %v5444_v40 = vld [vmem:[#allocation8 + $0x114] ss:$8 sps:$4 sm:$0xff]  }
 0x14d   :  { %2243 = vmatprep.subr.bf16.mxu0 %v5393_v43  ;;  %v5447_v43 = vld [vmem:[#allocation8 + $0x124] ss:$8 sps:$4 sm:$0xff]  }
 0x14f   :  { %1667 = vmatmul.mubr.bf16.vlgmr.msra.gmra.mrb[0].mxu0 %v4411_v45  ;;  %1831 = vmatmul.mubr.bf16.vlgmr.msra.gmra.mrb[0].mxu1 %v4411_v45  ;;  %v5450_v45 = vld [vmem:[#allocation8 + $0x134] ss:$8 sps:$4 sm:$0xff]  }
 0x150   :  { %2244 = vmatpush1.bf16.msra.mxu0 %v5391_v44  ;;  %2483 = vmatprep.mubr.bf16.mxu1 %v6017_v22  ;;  %v5445_v44 = vld [vmem:[#allocation8 + $0x120] ss:$8 sps:$4 sm:$0xff]  }
 0x151   :  { %2245 = vmatprep.subr.bf16.mxu0 %v5396_v46  ;;  %v5448_v46 = vld [vmem:[#allocation8 + $0x130] ss:$8 sps:$4 sm:$0xff]  }
 0x154   :  { %2246 = vmatpush1.bf16.msra.mxu0 %v5394_v47  ;;  %v5453_v47 = vld [vmem:[#allocation8 + $0x144] ss:$8 sps:$4 sm:$0xff]  }
 0x155   :  { %2247 = vmatprep.subr.bf16.mxu0 %v5399_v48  ;;  %v5451_v48 = vld [vmem:[#allocation8 + $0x140] ss:$8 sps:$4 sm:$0xff]  }
 0x158   :  { %2248 = vmatpush1.bf16.msra.mxu0 %v5397_v49  ;;  %v5456_v49 = vld [vmem:[#allocation8 + $0x154] ss:$8 sps:$4 sm:$0xff]  }
 0x159   :  { %2249 = vmatprep.subr.bf16.mxu0 %v5402_v50  ;;  %v5454_v50 = vld [vmem:[#allocation8 + $0x150] ss:$8 sps:$4 sm:$0xff]  }
 0x15c   :  { %2250 = vmatpush1.bf16.msra.mxu0 %v5400_v51  ;;  %v5459_v51 = vld [vmem:[#allocation8 + $0x164] ss:$8 sps:$4 sm:$0xff]  }
 0x15d   :  { %2251 = vmatprep.subr.bf16.mxu0 %v5405_v52  ;;  %v5457_v52 = vld [vmem:[#allocation8 + $0x160] ss:$8 sps:$4 sm:$0xff]  }
 0x160   :  { %2252 = vmatpush1.bf16.msra.mxu0 %v5403_v53  ;;  %v5462_v53 = vld [vmem:[#allocation8 + $0x174] ss:$8 sps:$4 sm:$0xff]  }
 0x161   :  { %2253 = vmatprep.subr.bf16.mxu0 %v5408_v54  ;;  %v5460_v54 = vld [vmem:[#allocation8 + $0x170] ss:$8 sps:$4 sm:$0xff]  }
 0x164   :  { %2254 = vmatpush1.bf16.msra.mxu0 %v5406_v55  ;;  %v5465_v55 = vld [vmem:[#allocation8 + $0x184] ss:$8 sps:$4 sm:$0xff]  }
 0x165   :  { %2255 = vmatprep.subr.bf16.mxu0 %v5411_v56  ;;  %v5463_v56 = vld [vmem:[#allocation8 + $0x180] ss:$8 sps:$4 sm:$0xff]  }
 0x168   :  { %2256 = vmatpush1.bf16.msra.mxu0 %v5409_v57  ;;  %v5468_v57 = vld [vmem:[#allocation8 + $0x194] ss:$8 sps:$4 sm:$0xff]  }
 0x169   :  { %2257 = vmatprep.subr.bf16.mxu0 %v5414_v58  ;;  %v5466_v58 = vld [vmem:[#allocation8 + $0x190] ss:$8 sps:$4 sm:$0xff]  }
 0x16c   :  { %2258 = vmatpush1.bf16.msra.mxu0 %v5412_v59  ;;  %v5471_v59 = vld [vmem:[#allocation8 + $0x1a4] ss:$8 sps:$4 sm:$0xff]  }
 0x16d   :  { %2259 = vmatprep.subr.bf16.mxu0 %v5417_v60  ;;  %v5469_v60 = vld [vmem:[#allocation8 + $0x1a0] ss:$8 sps:$4 sm:$0xff]  }
 0x170   :  { %2260 = vmatpush1.bf16.msra.mxu0 %v5415_v61  ;;  %v5474_v61 = vld [vmem:[#allocation8 + $0x1b4] ss:$8 sps:$4 sm:$0xff]  }
 0x171   :  { %2261 = vmatprep.subr.bf16.mxu0 %v5420_v62  ;;  %v5472_v62 = vld [vmem:[#allocation8 + $0x1b0] ss:$8 sps:$4 sm:$0xff]  }
 0x174   :  { %2262 = vmatpush1.bf16.msra.mxu0 %v5418_v63  ;;  %v5477_v63 = vld [vmem:[#allocation8 + $0x1c4] ss:$8 sps:$4 sm:$0xff]  }
 0x175   :  { %2263 = vmatprep.subr.bf16.mxu0 %v5423_v0  ;;  %v5475_v0 = vld [vmem:[#allocation8 + $0x1c0] ss:$8 sps:$4 sm:$0xff]  }
 0x178   :  { %2264 = vmatpush1.bf16.msra.mxu0 %v5421_v1  ;;  %v6207_v1 = vsub.s32 2, %v6182_v15 }
 0x179   :  { %2265 = vmatprep.subr.bf16.mxu0 %v5426_v2  ;;  %v5480_v2 = vld [vmem:[#allocation8 + $0x1d4] ss:$8 sps:$4 sm:$0xff]  }
 0x17c   :  { %2266 = vmatpush1.bf16.msra.mxu0 %v5424_v3  ;;  %v5478_v3 = vld [vmem:[#allocation8 + $0x1d0] ss:$8 sps:$4 sm:$0xff]  }
 0x17d   :  { %2267 = vmatprep.subr.bf16.mxu0 %v5429_v4  ;;  %v357_v4 = vrot.slane %v6190_v17, %v6207_v1  ;;  %v5490_v17 = vld [vmem:[#allocation10 + $0x8] ss:$16 sps:$4 sm:$0xff]  }
 0x180   :  { %2268 = vmatpush1.bf16.msra.mxu0 %v5427_v5  ;;  %v5483_v5 = vld [vmem:[#allocation8 + $0x1e4] ss:$8 sps:$4 sm:$0xff]  }
 0x181   :  { %2269 = vmatprep.subr.bf16.mxu0 %v5432_v6  ;;  %v5481_v6 = vld [vmem:[#allocation8 + $0x1e0] ss:$8 sps:$4 sm:$0xff]  }
 0x184   :  { %2270 = vmatpush1.bf16.msra.mxu0 %v5430_v7 }
 0x185   :  { %2271 = vmatprep.subr.bf16.mxu0 %v5435_v8  ;;  %v5486_v8 = vld [vmem:[#allocation8 + $0x1f4] ss:$8 sps:$4 sm:$0xff]  }
 0x188   :  { %2272 = vmatpush1.bf16.msra.mxu0 %v5433_v9  ;;  %v5484_v9 = vld [vmem:[#allocation8 + $0x1f0] ss:$8 sps:$4 sm:$0xff]  }
 0x189   :  { %2273 = vmatprep.subr.bf16.mxu0 %v5438_v10 }
 0x18c   :  { %2274 = vmatpush1.bf16.msra.mxu0 %v5436_v12 }
 0x18d   :  { %2284 = vmatprep.subr.bf16.mxu0 %v5441_v13  ;;  %v5487_v13 = vld [vmem:[#allocation10] ss:$16 sps:$4 sm:$0xff]  }
 0x222   :  { %v1668_v23 = vpop.f32.mrb[0].mxu0  ;;  %v6204_v24 = vpop.f32.mrb[0].mxu1 }
 0x223   :  { %v4980_v25 = vadd.f32 %v1668_v23, %v349_v20  ;;  %v1670_v26 = vpop.f32.mrb[1].mxu0  ;;  %v1834_v27 = vpop.f32.mrb[1].mxu1  ;;  %v4982_v7 = vadd.f32 %v6204_v24, %v357_v4  ;;  %v5492_v20 = vld [vmem:[#allocation10 + $0xc] ss:$16 sps:$4 sm:$0xff]   ;;  %v5520_v4 = vld [vmem:[#allocation11 + $0xb4] ss:$28 sps:$4 sm:$0xff]  }
 0x224   :  { %v4981_v28 = vadd.f32 %v1670_v26, %v353_v21  ;;  %v4983_v29 = vadd.f32 %v1834_v27, %v361_v11  ;;  %v1672_v30 = vpop.f32.mrb[2].mxu0  ;;  %v1836_v31 = vpop.f32.mrb[2].mxu1  ;;  %v2339_v21 = vld [vmem:[#allocation10 + $0x20] sm:$0x33]  ;;  %v2340_v24 = vld [vmem:[#allocation10 + $0x28] sm:$0x33]  ;;  %2451 = vmatprep.subr.bf16.mxu1 %v5492_v20 }
 0x225   :  { %v1839_v32 = vmax.f32 %v4980_v25, 0.0  ;;  %v1673_v33 = vpop.f32.mrb[3].mxu0  ;;  %v1837_v34 = vpop.f32.mrb[3].mxu1  ;;  %v1841_v10 = vmax.f32 %v4982_v7, 0.0  ;;  %v4705_v11 = vcombine.high %v2339_v21, %v2339_v21  ;;  %v4704_v23 = vcombine.low %v2339_v21, %v2339_v21  ;;  %2452 = vmatpush1.bf16.msra.mxu1 %v5490_v17  ;;  %v5523_v7 = vld [vmem:[#allocation11 + $0xe4] ss:$28 sps:$4 sm:$0xff]  }
 0x226   :  { %v1840_v35 = vmax.f32 %v4981_v28, 0.0  ;;  %v1842_v36 = vmax.f32 %v4983_v29, 0.0  ;;  %v4707_v25 = vcombine.high %v2340_v24, %v2340_v24  ;;  %v4706_v26 = vcombine.low %v2340_v24, %v2340_v24  ;;  %v5530_v17 = vld [vmem:[#allocation11 + $0x120] ss:$28 sps:$4 sm:$0xff]   ;;  %v5535_v20 = vld [vmem:[#allocation11 + $0x154] ss:$28 sps:$4 sm:$0xff]  }
 0x227   :  { %v1843_v39 = vpack.c.bf16 %v1839_v32, %v1839_v32  ;;  %v1845_v12 = vpack.c.bf16 %v1841_v10, %v1841_v10  ;;  %v2399_v27 = vsel %vm2397_vm0, %v4704_v23, 0  ;;  %v5524_v10 = vld [vmem:[#allocation11 + $0xe8] ss:$28 sps:$4 sm:$0xff]   ;;  %v5538_v21 = vld [vmem:[#allocation11 + $0x15c] ss:$28 sps:$4 sm:$0xff]  }
 0x228   :  { %v1844_v37 = vpack.c.bf16 %v1840_v35, %v1840_v35  ;;  %v1846_v41 = vpack.c.bf16 %v1842_v36, %v1842_v36  ;;  %4710 = vmatprep.subr.msk.bf16.mxu1 %vm2397_vm0, %v4707_v25  ;;  %v2405_v28 = vsel %vm2397_vm0, %v4706_v26, 0  ;;  %v5536_v23 = vld [vmem:[#allocation11 + $0x158] ss:$28 sps:$4 sm:$0xff]   ;;  %v5541_v24 = vld [vmem:[#allocation11 + $0x18c] ss:$28 sps:$4 sm:$0xff]  }
 0x229   :  { %2454 = vmatpush1.bf16.msra.mxu1 %v2405_v28  ;;  %v5544_v25 = vld [vmem:[#allocation11 + $0x194] ss:$28 sps:$4 sm:$0xff]   ;;  %v5539_v26 = vld [vmem:[#allocation11 + $0x188] ss:$28 sps:$4 sm:$0xff]  }
 0x22a   :  { %2275 = vmatprep.mubr.bf16.mxu0 %v1844_v37  ;;  %v5547_v28 = vld [vmem:[#allocation11 + $0x1c4] ss:$28 sps:$4 sm:$0xff]  }
 0x22b   :  { %2276 = vmatmul.mubr.bf16.vlgmr.msra.gmra.mrb[4].mxu0 %v1843_v39 }
 0x22c   :  { %2285 = vmatpush1.bf16.msra.mxu0 %v5439_v38  ;;  %2316 = vmatprep.mubr.bf16.mxu0 %v1846_v41 }
 0x22d   :  { %2286 = vmatprep.subr.bf16.mxu0 %v5444_v40 }
 0x230   :  { %2287 = vmatpush1.bf16.msra.mxu0 %v5442_v42 }
 0x231   :  { %2288 = vmatprep.subr.bf16.mxu0 %v5447_v43 }
 0x234   :  { %2289 = vmatpush1.bf16.msra.mxu0 %v5445_v44  ;;  %v119_v44 = vld [vmem:[#allocation5] sm:$0xff] }
 0x235   :  { %2290 = vmatprep.subr.bf16.mxu0 %v5450_v45 }
 0x238   :  { %2291 = vmatpush1.bf16.msra.mxu0 %v5448_v46 }
 0x239   :  { %2292 = vmatprep.subr.bf16.mxu0 %v5453_v47 }
 0x23c   :  { %2293 = vmatpush1.bf16.msra.mxu0 %v5451_v48 }
 0x23d   :  { %2294 = vmatprep.subr.bf16.mxu0 %v5456_v49 }
 0x240   :  { %2295 = vmatpush1.bf16.msra.mxu0 %v5454_v50 }
 0x241   :  { %2296 = vmatprep.subr.bf16.mxu0 %v5459_v51 }
 0x244   :  { %2297 = vmatpush1.bf16.msra.mxu0 %v5457_v52 }
 0x245   :  { %2298 = vmatprep.subr.bf16.mxu0 %v5462_v53 }
 0x248   :  { %2299 = vmatpush1.bf16.msra.mxu0 %v5460_v54  ;;  %v5497_v54 = vld [vmem:[#allocation11] ss:$28 sps:$4 sm:$0xff]  }
 0x249   :  { %2300 = vmatprep.subr.bf16.mxu0 %v5465_v55  ;;  %v5499_v55 = vld [vmem:[#allocation11 + $0x4] ss:$28 sps:$4 sm:$0xff]  }
 0x24a   :  { %3945 = vmatprep.subr.bf16.mxu1 %v5499_v55  ;;  %v5589_v55 = vld [vmem:[#allocation11 + $0x34c] ss:$28 sps:$4 sm:$0xff]  }
 0x24c   :  { %2301 = vmatpush1.bf16.msra.mxu0 %v5463_v56  ;;  %v5500_v56 = vld [vmem:[#allocation11 + $0x8] ss:$28 sps:$4 sm:$0xff]  }
 0x24d   :  { %2302 = vmatprep.subr.bf16.mxu0 %v5468_v57  ;;  %v5502_v57 = vld [vmem:[#allocation11 + $0xc] ss:$28 sps:$4 sm:$0xff]  }
 0x250   :  { %2303 = vmatpush1.bf16.msra.mxu0 %v5466_v58  ;;  %v5505_v58 = vld [vmem:[#allocation11 + $0x3c] ss:$28 sps:$4 sm:$0xff]  }
 0x251   :  { %2304 = vmatprep.subr.bf16.mxu0 %v5471_v59  ;;  %v5508_v59 = vld [vmem:[#allocation11 + $0x44] ss:$28 sps:$4 sm:$0xff]  }
 0x254   :  { %2305 = vmatpush1.bf16.msra.mxu0 %v5469_v60  ;;  %v5503_v60 = vld [vmem:[#allocation11 + $0x38] ss:$28 sps:$4 sm:$0xff]  }
 0x255   :  { %2306 = vmatprep.subr.bf16.mxu0 %v5474_v61  ;;  %v5506_v61 = vld [vmem:[#allocation11 + $0x40] ss:$28 sps:$4 sm:$0xff]  }
 0x258   :  { %2307 = vmatpush1.bf16.msra.mxu0 %v5472_v62  ;;  %v5511_v62 = vld [vmem:[#allocation11 + $0x74] ss:$28 sps:$4 sm:$0xff]  }
 0x259   :  { %2308 = vmatprep.subr.bf16.mxu0 %v5477_v63  ;;  %v5514_v63 = vld [vmem:[#allocation11 + $0x7c] ss:$28 sps:$4 sm:$0xff]  }
 0x25c   :  { %2309 = vmatpush1.bf16.msra.mxu0 %v5475_v0  ;;  %v5509_v0 = vld [vmem:[#allocation11 + $0x70] ss:$28 sps:$4 sm:$0xff]  }
 0x25d   :  { %2310 = vmatprep.subr.bf16.mxu0 %v5480_v2  ;;  %v5512_v2 = vld [vmem:[#allocation11 + $0x78] ss:$28 sps:$4 sm:$0xff]  }
 0x260   :  { %2311 = vmatpush1.bf16.msra.mxu0 %v5478_v3  ;;  %v5517_v3 = vld [vmem:[#allocation11 + $0xac] ss:$28 sps:$4 sm:$0xff]  }
 0x261   :  { %2312 = vmatprep.subr.bf16.mxu0 %v5483_v5  ;;  %v5515_v5 = vld [vmem:[#allocation11 + $0xa8] ss:$28 sps:$4 sm:$0xff]  }
 0x264   :  { %2313 = vmatpush1.bf16.msra.mxu0 %v5481_v6  ;;  %v5518_v6 = vld [vmem:[#allocation11 + $0xb0] ss:$28 sps:$4 sm:$0xff]  }
 0x265   :  { %2314 = vmatprep.subr.bf16.mxu0 %v5486_v8  ;;  %v5526_v8 = vld [vmem:[#allocation11 + $0xec] ss:$28 sps:$4 sm:$0xff]  }
 0x268   :  { %2315 = vmatpush1.bf16.msra.mxu0 %v5484_v9  ;;  %v5521_v9 = vld [vmem:[#allocation11 + $0xe0] ss:$28 sps:$4 sm:$0xff]  }
 0x269   :  { %2410 = vmatprep.subr.bf16.mxu0 %v5489_v14  ;;  %v5527_v14 = vld [vmem:[#allocation11 + $0x118] ss:$28 sps:$4 sm:$0xff]  }
 0x26b   :  { %2317 = vmatmul.mubr.bf16.vlgmr.msra.gmra.mrb[4].mxu0 %v1845_v12  ;;  %v5529_v12 = vld [vmem:[#allocation11 + $0x11c] ss:$28 sps:$4 sm:$0xff]  }
 0x26c   :  { %2442 = vmatprep.mubr.bf16.mxu0 %v6017_v22  ;;  %2411 = vmatpush1.bf16.msra.mxu0 %v5487_v13  ;;  %v1911_v22 = vld [vmem:[%s6298_s5] sm:$0x3]  ;;  %v5532_v13 = vld [vmem:[#allocation11 + $0x124] ss:$28 sps:$4 sm:$0xff]  }
 0x26d   :  { %4708 = vmatprep.subr.msk.bf16.mxu0 %vm2397_vm0, %v4705_v11  ;;  %v1916_v29 = vrot.slane %v1911_v22, %v6185_v16  ;;  %v1920_v30 = vrot.slane %v1911_v22, %v6193_v18  ;;  %v5533_v11 = vld [vmem:[#allocation11 + $0x150] ss:$28 sps:$4 sm:$0xff]  }
 0x26e   :  { %v5550_v22 = vld [vmem:[#allocation11 + $0x1cc] ss:$28 sps:$4 sm:$0xff]  }
 0x270   :  { %2413 = vmatpush1.bf16.msra.mxu0 %v2399_v27  ;;  %v5542_v27 = vld [vmem:[#allocation11 + $0x190] ss:$28 sps:$4 sm:$0xff]  }
 0x271   :  { %4027 = vmatprep.subr.bf16.mxu0 %v5502_v57  ;;  %v5587_v57 = vld [vmem:[#allocation11 + $0x348] ss:$28 sps:$4 sm:$0xff]  }
 0x33e   :  { %v2318_v31 = vpop.f32.mrb[4].mxu0 }
 0x33f   :  { %v4984_v32 = vadd.f32 %v2318_v31, %v1916_v29  ;;  %v2320_v33 = vpop.f32.mrb[5].mxu0  ;;  %v5545_v29 = vld [vmem:[#allocation11 + $0x1c0] ss:$28 sps:$4 sm:$0xff]  }
 0x340   :  { %v4985_v34 = vadd.f32 %v2320_v33, %v1920_v30  ;;  %v2322_v35 = vpop.f32.mrb[6].mxu0  ;;  %v5548_v30 = vld [vmem:[#allocation11 + $0x1c8] ss:$28 sps:$4 sm:$0xff]   ;;  %v5553_v31 = vld [vmem:[#allocation11 + $0x1fc] ss:$28 sps:$4 sm:$0xff]  }
 0x341   :  { %v4364_v36 = vmul.f32 %v4984_v32, %v4984_v32  ;;  %v2323_v37 = vpop.f32.mrb[7].mxu0  ;;  %v5551_v33 = vld [vmem:[#allocation11 + $0x1f8] ss:$28 sps:$4 sm:$0xff]  }
 0x342   :  { %5817 = vrsqrt.f32 %v4985_v34  ;;  %v4363_v38 = vadd.f32 1.0, %v4985_v34  ;;  %v4366_v39 = vadd.f32 1e-06, %v4985_v34  ;;  %vm2327_vm1 = vcmp.eq.f32.partialorder %v4985_v34, inf  ;;  %v5559_v35 = vld [vmem:[#allocation11 + $0x234] ss:$28 sps:$4 sm:$0xff]  }
 0x343   :  { %v2330_v45 = vand.u32 2147483648, %v4985_v34  ;;  %vm2329_vm2 = vcmp.eq.f32.partialorder %v4985_v34, 0.0  ;;  %v5557_v37 = vld [vmem:[#allocation11 + $0x230] ss:$28 sps:$4 sm:$0xff]  }
 0x344   :  { %v4365_v40 = vsub.f32 %v4363_v38, %v4364_v36  ;;  %5819 = vlog2.f32 %v4366_v39  ;;  %v5562_v36 = vld [vmem:[#allocation11 + $0x23c] ss:$28 sps:$4 sm:$0xff]   ;;  %v5565_v39 = vld [vmem:[#allocation11 + $0x26c] ss:$28 sps:$4 sm:$0xff]  }
 0x345   :  { %v5560_v38 = vld [vmem:[#allocation11 + $0x238] ss:$28 sps:$4 sm:$0xff]  }
 0x34c   :  { %v5818_v41 = vpop.eup %5817 }
 0x34d   :  { %v2326_v42 = vmul.f32 %v5818_v41, %v4985_v34  ;;  %v5563_v41 = vld [vmem:[#allocation11 + $0x268] ss:$28 sps:$4 sm:$0xff]  }
 0x34e   :  { %v5820_v43 = vpop.eup %5819 }
 0x34f   :  { %v4368_v46 = vmul.f32 0.6931472, %v5820_v43  ;;  %v2328_v47 = vsel %vm2327_vm1, %v4985_v34, %v2326_v42  ;;  %v5554_v34 = vld [vmem:[#allocation11 + $0x200] ss:$28 sps:$4 sm:$0xff]   ;;  %v5566_v42 = vld [vmem:[#allocation11 + $0x270] ss:$28 sps:$4 sm:$0xff]  }
 0x350   :  { %v2331_v48 = vsel %vm2329_vm2, %v2330_v45, %v2328_v47  ;;  %v5571_v43 = vld [vmem:[#allocation11 + $0x2a4] ss:$28 sps:$4 sm:$0xff]   ;;  %v5577_v47 = vld [vmem:[#allocation11 + $0x2dc] ss:$28 sps:$4 sm:$0xff]  }
 0x351   :  { %v4369_v49 = vadd.f32 %v4368_v46, %v4365_v40  ;;  %v2332_v50 = vmul.f32 %v2331_v48, %v119_v44  ;;  %v5568_v40 = vld [vmem:[#allocation11 + $0x274] ss:$28 sps:$4 sm:$0xff]   ;;  %v5574_v44 = vld [vmem:[#allocation11 + $0x2ac] ss:$28 sps:$4 sm:$0xff]   ;;  %v5569_v45 = vld [vmem:[#allocation11 + $0x2a0] ss:$28 sps:$4 sm:$0xff]  }
 0x352   :  { %v5572_v46 = vld [vmem:[#allocation11 + $0x2a8] ss:$28 sps:$4 sm:$0xff]  }
 0x353   :  { %v4370_v51 = vsel %vm2393_vm3, %v4369_v49, 0.0  ;;  %v2333_v52 = vadd.f32 %v4984_v32, %v2332_v50  ;;  %v5556_v32 = vld [vmem:[#allocation11 + $0x204] ss:$28 sps:$4 sm:$0xff]   ;;  %v5575_v49 = vld [vmem:[#allocation11 + $0x2d8] ss:$28 sps:$4 sm:$0xff]  }
 0x354   :  { %4371 = vadd.xlane.f32.xlu0 %v4370_v51  ;;  %v5580_v48 = vld [vmem:[#allocation11 + $0x2e4] ss:$28 sps:$4 sm:$0xff]   ;;  %v5583_v51 = vld [vmem:[#allocation11 + $0x314] ss:$28 sps:$4 sm:$0xff]  }
 0x355   :  { %v2334_v53 = vpack.c.bf16 %v2333_v52, %v2333_v52  ;;  %v5578_v50 = vld [vmem:[#allocation11 + $0x2e0] ss:$28 sps:$4 sm:$0xff]  }
 0x356   :  { %v5586_v52 = vld [vmem:[#allocation11 + $0x31c] ss:$28 sps:$4 sm:$0xff]  }
 0x357   :  { %4709 = vmatmul.mubr.msk.bf16.vlgmr.msra.gmra.mrb[8].mxu0 %vm2393_vm3, %v2334_v53  ;;  %4711 = vmatmul.mubr.msk.bf16.vlgmr.msra.gmra.mrb[4].mxu1 %vm2393_vm3, %v2334_v53  ;;  %v5581_v53 = vld [vmem:[#allocation11 + $0x310] ss:$28 sps:$4 sm:$0xff]  }
 0x358   :  { %3946 = vmatpush1.bf16.msra.mxu1 %v5497_v54  ;;  %4028 = vmatpush1.bf16.msra.mxu0 %v5500_v56  ;;  %v5584_v54 = vld [vmem:[#allocation11 + $0x318] ss:$28 sps:$4 sm:$0xff]  }
 0x359   :  { %3947 = vmatprep.subr.bf16.mxu1 %v5505_v58  ;;  %4029 = vmatprep.subr.bf16.mxu0 %v5508_v59  ;;  %v5592_v56 = vld [vmem:[#allocation11 + $0x354] ss:$28 sps:$4 sm:$0xff]   ;;  %v5595_v59 = vld [vmem:[#allocation11 + $0x384] ss:$28 sps:$4 sm:$0xff]  }
 0x35a   :  { %v5590_v58 = vld [vmem:[#allocation11 + $0x350] ss:$28 sps:$4 sm:$0xff]  }
 0x35c   :  { %3948 = vmatpush1.bf16.msra.mxu1 %v5503_v60  ;;  %4030 = vmatpush1.bf16.msra.mxu0 %v5506_v61  ;;  %v5598_v60 = vld [vmem:[#allocation11 + $0x38c] ss:$28 sps:$4 sm:$0xff]  }
 0x35d   :  { %3949 = vmatprep.subr.bf16.mxu1 %v5511_v62  ;;  %4031 = vmatprep.subr.bf16.mxu0 %v5514_v63  ;;  %v2341_v61 = vld [vmem:[%s6300_s7] sm:$0xf] }
 0x35e   :  { %v2346_v62 = vrot.slane %v2341_v61, %v6185_v16  ;;  %v2354_v63 = vrot.slane %v2341_v61, %v6207_v1 }
 0x360   :  { %3950 = vmatpush1.bf16.msra.mxu1 %v5509_v0  ;;  %4032 = vmatpush1.bf16.msra.mxu0 %v5512_v2  ;;  %v2350_v0 = vrot.slane %v2341_v61, %v6193_v18  ;;  %v2358_v2 = vrot.slane %v2341_v61, %v6196_v19  ;;  %v5647_v61 = vld [vmem:[#allocation11 + $0x578] ss:$28 sps:$4 sm:$0xff]  }
 0x361   :  { %3951 = vmatprep.subr.bf16.mxu1 %v5517_v3  ;;  %4033 = vmatprep.subr.bf16.mxu0 %v5520_v4 }
 0x364   :  { %3952 = vmatpush1.bf16.msra.mxu1 %v5515_v5  ;;  %4034 = vmatpush1.bf16.msra.mxu0 %v5518_v6 }
 0x365   :  { %3953 = vmatprep.subr.bf16.mxu1 %v5523_v7  ;;  %4035 = vmatprep.subr.bf16.mxu0 %v5526_v8 }
 0x368   :  { %3954 = vmatpush1.bf16.msra.mxu1 %v5521_v9  ;;  %4036 = vmatpush1.bf16.msra.mxu0 %v5524_v10 }
 0x369   :  { %3955 = vmatprep.subr.bf16.mxu1 %v5529_v12  ;;  %4037 = vmatprep.subr.bf16.mxu0 %v5532_v13 }
 0x36c   :  { %3956 = vmatpush1.bf16.msra.mxu1 %v5527_v14  ;;  %4038 = vmatpush1.bf16.msra.mxu0 %v5530_v17 }
 0x36d   :  { %3957 = vmatprep.subr.bf16.mxu1 %v5535_v20  ;;  %4039 = vmatprep.subr.bf16.mxu0 %v5538_v21 }
 0x370   :  { %3958 = vmatpush1.bf16.msra.mxu1 %v5533_v11  ;;  %4040 = vmatpush1.bf16.msra.mxu0 %v5536_v23 }
 0x371   :  { %3959 = vmatprep.subr.bf16.mxu1 %v5541_v24  ;;  %4041 = vmatprep.subr.bf16.mxu0 %v5544_v25  ;;  %v5593_v24 = vld [vmem:[#allocation11 + $0x380] ss:$28 sps:$4 sm:$0xff]   ;;  %v5596_v25 = vld [vmem:[#allocation11 + $0x388] ss:$28 sps:$4 sm:$0xff]  }
 0x374   :  { %3960 = vmatpush1.bf16.msra.mxu1 %v5539_v26  ;;  %4042 = vmatpush1.bf16.msra.mxu0 %v5542_v27  ;;  %v5601_v27 = vld [vmem:[#allocation11 + $0x3bc] ss:$28 sps:$4 sm:$0xff]  }
 0x375   :  { %3961 = vmatprep.subr.bf16.mxu1 %v5547_v28  ;;  %4043 = vmatprep.subr.bf16.mxu0 %v5550_v22  ;;  %v5604_v28 = vld [vmem:[#allocation11 + $0x3c4] ss:$28 sps:$4 sm:$0xff]  }
 0x378   :  { %3962 = vmatpush1.bf16.msra.mxu1 %v5545_v29  ;;  %4044 = vmatpush1.bf16.msra.mxu0 %v5548_v30  ;;  %v5599_v29 = vld [vmem:[#allocation11 + $0x3b8] ss:$28 sps:$4 sm:$0xff]   ;;  %v5602_v30 = vld [vmem:[#allocation11 + $0x3c0] ss:$28 sps:$4 sm:$0xff]  }
 0x379   :  { %3963 = vmatprep.subr.bf16.mxu1 %v5553_v31  ;;  %4045 = vmatprep.subr.bf16.mxu0 %v5556_v32  ;;  %v5607_v31 = vld [vmem:[#allocation11 + $0x3f4] ss:$28 sps:$4 sm:$0xff]   ;;  %v5610_v32 = vld [vmem:[#allocation11 + $0x3fc] ss:$28 sps:$4 sm:$0xff]  }
 0x37c   :  { %3964 = vmatpush1.bf16.msra.mxu1 %v5551_v33  ;;  %4046 = vmatpush1.bf16.msra.mxu0 %v5554_v34  ;;  %v5605_v33 = vld [vmem:[#allocation11 + $0x3f0] ss:$28 sps:$4 sm:$0xff]   ;;  %v5608_v34 = vld [vmem:[#allocation11 + $0x3f8] ss:$28 sps:$4 sm:$0xff]  }
 0x37d   :  { %3965 = vmatprep.subr.bf16.mxu1 %v5559_v35  ;;  %4047 = vmatprep.subr.bf16.mxu0 %v5562_v36  ;;  %v5613_v35 = vld [vmem:[#allocation11 + $0x42c] ss:$28 sps:$4 sm:$0xff]   ;;  %v5616_v36 = vld [vmem:[#allocation11 + $0x434] ss:$28 sps:$4 sm:$0xff]  }
 0x380   :  { %3966 = vmatpush1.bf16.msra.mxu1 %v5557_v37  ;;  %4048 = vmatpush1.bf16.msra.mxu0 %v5560_v38  ;;  %v5611_v37 = vld [vmem:[#allocation11 + $0x428] ss:$28 sps:$4 sm:$0xff]   ;;  %v5614_v38 = vld [vmem:[#allocation11 + $0x430] ss:$28 sps:$4 sm:$0xff]  }
 0x381   :  { %3967 = vmatprep.subr.bf16.mxu1 %v5565_v39  ;;  %4049 = vmatprep.subr.bf16.mxu0 %v5568_v40  ;;  %v5619_v39 = vld [vmem:[#allocation11 + $0x464] ss:$28 sps:$4 sm:$0xff]   ;;  %v5622_v40 = vld [vmem:[#allocation11 + $0x46c] ss:$28 sps:$4 sm:$0xff]  }
 0x384   :  { %3968 = vmatpush1.bf16.msra.mxu1 %v5563_v41  ;;  %4050 = vmatpush1.bf16.msra.mxu0 %v5566_v42  ;;  %v5617_v41 = vld [vmem:[#allocation11 + $0x460] ss:$28 sps:$4 sm:$0xff]   ;;  %v5620_v42 = vld [vmem:[#allocation11 + $0x468] ss:$28 sps:$4 sm:$0xff]  }
 0x385   :  { %3969 = vmatprep.subr.bf16.mxu1 %v5571_v43  ;;  %4051 = vmatprep.subr.bf16.mxu0 %v5574_v44  ;;  %v5625_v43 = vld [vmem:[#allocation11 + $0x49c] ss:$28 sps:$4 sm:$0xff]   ;;  %v5628_v44 = vld [vmem:[#allocation11 + $0x4a4] ss:$28 sps:$4 sm:$0xff]  }
 0x388   :  { %3970 = vmatpush1.bf16.msra.mxu1 %v5569_v45  ;;  %4052 = vmatpush1.bf16.msra.mxu0 %v5572_v46  ;;  %v5623_v45 = vld [vmem:[#allocation11 + $0x498] ss:$28 sps:$4 sm:$0xff]   ;;  %v5626_v46 = vld [vmem:[#allocation11 + $0x4a0] ss:$28 sps:$4 sm:$0xff]  }
 0x389   :  { %3971 = vmatprep.subr.bf16.mxu1 %v5577_v47  ;;  %4053 = vmatprep.subr.bf16.mxu0 %v5580_v48  ;;  %v5631_v47 = vld [vmem:[#allocation11 + $0x4d4] ss:$28 sps:$4 sm:$0xff]   ;;  %v5634_v48 = vld [vmem:[#allocation11 + $0x4dc] ss:$28 sps:$4 sm:$0xff]  }
 0x38c   :  { %3972 = vmatpush1.bf16.msra.mxu1 %v5575_v49  ;;  %4054 = vmatpush1.bf16.msra.mxu0 %v5578_v50  ;;  %v5629_v49 = vld [vmem:[#allocation11 + $0x4d0] ss:$28 sps:$4 sm:$0xff]   ;;  %v5632_v50 = vld [vmem:[#allocation11 + $0x4d8] ss:$28 sps:$4 sm:$0xff]  }
 0x38d   :  { %3973 = vmatprep.subr.bf16.mxu1 %v5583_v51  ;;  %4055 = vmatprep.subr.bf16.mxu0 %v5586_v52  ;;  %v5637_v51 = vld [vmem:[#allocation11 + $0x50c] ss:$28 sps:$4 sm:$0xff]   ;;  %v5640_v52 = vld [vmem:[#allocation11 + $0x514] ss:$28 sps:$4 sm:$0xff]  }
 0x390   :  { %3974 = vmatpush1.bf16.msra.mxu1 %v5581_v53  ;;  %4056 = vmatpush1.bf16.msra.mxu0 %v5584_v54  ;;  %v5635_v53 = vld [vmem:[#allocation11 + $0x508] ss:$28 sps:$4 sm:$0xff]   ;;  %v5638_v54 = vld [vmem:[#allocation11 + $0x510] ss:$28 sps:$4 sm:$0xff]  }
 0x391   :  { %3975 = vmatprep.subr.bf16.mxu1 %v5589_v55  ;;  %4057 = vmatprep.subr.bf16.mxu0 %v5592_v56  ;;  %v5643_v55 = vld [vmem:[#allocation11 + $0x544] ss:$28 sps:$4 sm:$0xff]   ;;  %v5646_v56 = vld [vmem:[#allocation11 + $0x54c] ss:$28 sps:$4 sm:$0xff]  }
 0x394   :  { %3976 = vmatpush1.bf16.msra.mxu1 %v5587_v57  ;;  %4058 = vmatpush1.bf16.msra.mxu0 %v5590_v58  ;;  %v5641_v57 = vld [vmem:[#allocation11 + $0x540] ss:$28 sps:$4 sm:$0xff]   ;;  %v5644_v58 = vld [vmem:[#allocation11 + $0x548] ss:$28 sps:$4 sm:$0xff]  }
 0x395   :  { %3986 = vmatprep.subr.bf16.mxu1 %v5595_v59  ;;  %4068 = vmatprep.subr.bf16.mxu0 %v5598_v60  ;;  %v5649_v59 = vld [vmem:[#allocation11 + $0x57c] ss:$28 sps:$4 sm:$0xff]   ;;  %v5652_v60 = vld [vmem:[#allocation11 + $0x584] ss:$28 sps:$4 sm:$0xff]  }
 0x42a   :  { %v2444_v3 = vpop.f32.mrb[8].mxu0  ;;  %v2485_v4 = vpop.f32.mrb[4].mxu1 }
 0x42b   :  { %v2445_v5 = vadd.f32 %v2444_v3, %v2346_v62  ;;  %v6225_v6 = vadd.f32 %v2485_v4, %v2354_v63  ;;  %v2446_v7 = vpop.f32.mrb[9].mxu0  ;;  %v2487_v8 = vpop.f32.mrb[5].mxu1  ;;  %v5650_v62 = vld [vmem:[#allocation11 + $0x580] ss:$28 sps:$4 sm:$0xff]   ;;  %v5655_v63 = vld [vmem:[#allocation11 + $0x5b4] ss:$28 sps:$4 sm:$0xff]  }
 0x42c   :  { %v2447_v9 = vadd.f32 %v2446_v7, %v2350_v0  ;;  %v2488_v10 = vadd.f32 %v2487_v8, %v2358_v2  ;;  %v2448_v12 = vpop.f32.mrb[10].mxu0  ;;  %v2489_v13 = vpop.f32.mrb[6].mxu1  ;;  %v5658_v0 = vld [vmem:[#allocation11 + $0x5bc] ss:$28 sps:$4 sm:$0xff]   ;;  %v5653_v2 = vld [vmem:[#allocation11 + $0x5b0] ss:$28 sps:$4 sm:$0xff]  }
 0x42d   :  { %v2492_v14 = vmax.f32 %v2445_v5, 0.0  ;;  %v2449_v17 = vpop.f32.mrb[11].mxu0  ;;  %v2490_v20 = vpop.f32.mrb[7].mxu1  ;;  %v5656_v3 = vld [vmem:[#allocation11 + $0x5b8] ss:$28 sps:$4 sm:$0xff]  }
 0x42e   :  { %v2493_v21 = vmax.f32 %v2447_v9, 0.0  ;;  %v2495_v11 = vmax.f32 %v2488_v10, 0.0  ;;  %v5661_v4 = vld [vmem:[#allocation11 + $0x5ec] ss:$28 sps:$4 sm:$0xff]   ;;  %v5664_v5 = vld [vmem:[#allocation11 + $0x5f4] ss:$28 sps:$4 sm:$0xff]  }
 0x42f   :  { %v6229_v26 = vpack.c.bf16 %v2492_v14, %v2492_v14  ;;  %v5659_v7 = vld [vmem:[#allocation11 + $0x5e8] ss:$28 sps:$4 sm:$0xff]   ;;  %v5662_v8 = vld [vmem:[#allocation11 + $0x5f0] ss:$28 sps:$4 sm:$0xff]   ;;  %v5665_v12 = vld [vmem:[#allocation11 + $0x620] ss:$28 sps:$4 sm:$0xff]  }
 0x430   :  { %v6227_v23 = vpack.c.bf16 %v2493_v21, %v2493_v21  ;;  %v6233_v22 = vpack.c.bf16 %v2495_v11, %v2495_v11  ;;  %v5667_v9 = vld [vmem:[#allocation11 + $0x624] ss:$28 sps:$4 sm:$0xff]   ;;  %v5670_v10 = vld [vmem:[#allocation11 + $0x62c] ss:$28 sps:$4 sm:$0xff]   ;;  %v5673_v14 = vld [vmem:[#allocation11 + $0x65c] ss:$28 sps:$4 sm:$0xff]  }
 0x431   :  { %v5668_v13 = vld [vmem:[#allocation11 + $0x628] ss:$28 sps:$4 sm:$0xff]   ;;  %v5671_v20 = vld [vmem:[#allocation11 + $0x658] ss:$28 sps:$4 sm:$0xff]   ;;  %v5674_v21 = vld [vmem:[#allocation11 + $0x660] ss:$28 sps:$4 sm:$0xff]  }
 0x432   :  { %3977 = vmatprep.mubr.bf16.mxu1 %v6227_v23  ;;  %4059 = vmatprep.mubr.bf16.mxu0 %v6227_v23  ;;  %v5676_v17 = vld [vmem:[#allocation11 + $0x664] ss:$28 sps:$4 sm:$0xff]   ;;  %v5679_v11 = vld [vmem:[#allocation11 + $0x694] ss:$28 sps:$4 sm:$0xff]  }
 0x433   :  { %3978 = vmatmul.mubr.bf16.vlgmr.msra.gmra.mrb[8].mxu1 %v6229_v26  ;;  %4060 = vmatmul.mubr.bf16.vlgmr.msra.gmra.mrb[12].mxu0 %v6229_v26 }
 0x434   :  { %3987 = vmatpush1.bf16.msra.mxu1 %v5593_v24  ;;  %4069 = vmatpush1.bf16.msra.mxu0 %v5596_v25  ;;  %v5682_v24 = vld [vmem:[#allocation11 + $0x69c] ss:$28 sps:$4 sm:$0xff]   ;;  %v5677_v25 = vld [vmem:[#allocation11 + $0x690] ss:$28 sps:$4 sm:$0xff]  }
 0x435   :  { %4018 = vmatprep.mubr.bf16.mxu1 %v6233_v22  ;;  %4100 = vmatprep.mubr.bf16.mxu0 %v6233_v22 }
 0x436   :  { %3988 = vmatprep.subr.bf16.mxu1 %v5601_v27  ;;  %4070 = vmatprep.subr.bf16.mxu0 %v5604_v28  ;;  %v5680_v27 = vld [vmem:[#allocation11 + $0x698] ss:$28 sps:$4 sm:$0xff]   ;;  %v5685_v28 = vld [vmem:[#allocation11 + $0x6cc] ss:$28 sps:$4 sm:$0xff]  }
 0x438   :  { %3989 = vmatpush1.bf16.msra.mxu1 %v5599_v29  ;;  %4071 = vmatpush1.bf16.msra.mxu0 %v5602_v30  ;;  %v5688_v29 = vld [vmem:[#allocation11 + $0x6d4] ss:$28 sps:$4 sm:$0xff]   ;;  %v5683_v30 = vld [vmem:[#allocation11 + $0x6c8] ss:$28 sps:$4 sm:$0xff]  }
 0x439   :  { %3990 = vmatprep.subr.bf16.mxu1 %v5607_v31  ;;  %4072 = vmatprep.subr.bf16.mxu0 %v5610_v32  ;;  %v5686_v31 = vld [vmem:[#allocation11 + $0x6d0] ss:$28 sps:$4 sm:$0xff]   ;;  %v2494_v32 = vmax.f32 %v6225_v6, 0.0  ;;  %v5694_v6 = vld [vmem:[#allocation11 + $0x48] ss:$28 sps:$4 sm:$0xff]  }
 0x43c   :  { %3991 = vmatpush1.bf16.msra.mxu1 %v5605_v33  ;;  %4073 = vmatpush1.bf16.msra.mxu0 %v5608_v34  ;;  %v5691_v33 = vld [vmem:[#allocation11 + $0x14] ss:$28 sps:$4 sm:$0xff]  }
 0x43d   :  { %3992 = vmatprep.subr.bf16.mxu1 %v5613_v35  ;;  %4074 = vmatprep.subr.bf16.mxu0 %v5616_v36  ;;  %v5692_v34 = vld [vmem:[#allocation11 + $0x1d8] ss:$28 sps:$4 sm:$0xff]   ;;  %v5689_v35 = vld [vmem:[#allocation11 + $0x10] ss:$28 sps:$4 sm:$0xff]   ;;  %v6240_v36 = vpack.c.bf16 %v2494_v32, %v2494_v32 }
 0x43e   :  { %v5762_v32 = vld [vmem:[#allocation11 + $0x438] ss:$28 sps:$4 sm:$0xff]  }
 0x440   :  { %3993 = vmatpush1.bf16.msra.mxu1 %v5611_v37  ;;  %4075 = vmatpush1.bf16.msra.mxu0 %v5614_v38  ;;  %v5693_v37 = vld [vmem:[#allocation11 + $0x18] ss:$28 sps:$4 sm:$0xff]   ;;  %v5696_v38 = vld [vmem:[#allocation11 + $0x4c] ss:$28 sps:$4 sm:$0xff]  }
 0x441   :  { %3994 = vmatprep.subr.bf16.mxu1 %v5619_v39  ;;  %4076 = vmatprep.subr.bf16.mxu0 %v5622_v40  ;;  %v5697_v39 = vld [vmem:[#allocation11 + $0x210] ss:$28 sps:$4 sm:$0xff]  }
 0x442   :  { %v5698_v40 = vld [vmem:[#allocation11 + $0x50] ss:$28 sps:$4 sm:$0xff]  }
 0x444   :  { %3995 = vmatpush1.bf16.msra.mxu1 %v5617_v41  ;;  %4077 = vmatpush1.bf16.msra.mxu0 %v5620_v42  ;;  %v5701_v41 = vld [vmem:[#allocation11 + $0x84] ss:$28 sps:$4 sm:$0xff]  }
 0x445   :  { %3996 = vmatprep.subr.bf16.mxu1 %v5625_v43  ;;  %4078 = vmatprep.subr.bf16.mxu0 %v5628_v44  ;;  %v5702_v42 = vld [vmem:[#allocation11 + $0x248] ss:$28 sps:$4 sm:$0xff]   ;;  %v5699_v43 = vld [vmem:[#allocation11 + $0x80] ss:$28 sps:$4 sm:$0xff]  }
 0x446   :  { %v5703_v44 = vld [vmem:[#allocation11 + $0x88] ss:$28 sps:$4 sm:$0xff]  }
 0x448   :  { %3997 = vmatpush1.bf16.msra.mxu1 %v5623_v45  ;;  %4079 = vmatpush1.bf16.msra.mxu0 %v5626_v46  ;;  %v5706_v45 = vld [vmem:[#allocation11 + $0xbc] ss:$28 sps:$4 sm:$0xff]  }
 0x449   :  { %3998 = vmatprep.subr.bf16.mxu1 %v5631_v47  ;;  %4080 = vmatprep.subr.bf16.mxu0 %v5634_v48  ;;  %v5707_v46 = vld [vmem:[#allocation11 + $0x280] ss:$28 sps:$4 sm:$0xff]   ;;  %v5704_v47 = vld [vmem:[#allocation11 + $0xb8] ss:$28 sps:$4 sm:$0xff]  }
 0x44a   :  { %v5708_v48 = vld [vmem:[#allocation11 + $0xc0] ss:$28 sps:$4 sm:$0xff]  }
 0x44c   :  { %3999 = vmatpush1.bf16.msra.mxu1 %v5629_v49  ;;  %4081 = vmatpush1.bf16.msra.mxu0 %v5632_v50  ;;  %v5711_v49 = vld [vmem:[#allocation11 + $0xf4] ss:$28 sps:$4 sm:$0xff]  }
 0x44d   :  { %4000 = vmatprep.subr.bf16.mxu1 %v5637_v51  ;;  %4082 = vmatprep.subr.bf16.mxu0 %v5640_v52  ;;  %v5709_v50 = vld [vmem:[#allocation11 + $0xf0] ss:$28 sps:$4 sm:$0xff]   ;;  %v5713_v51 = vld [vmem:[#allocation11 + $0xf8] ss:$28 sps:$4 sm:$0xff]  }
 0x44e   :  { %v5716_v52 = vld [vmem:[#allocation11 + $0x12c] ss:$28 sps:$4 sm:$0xff]  }
 0x450   :  { %4001 = vmatpush1.bf16.msra.mxu1 %v5635_v53  ;;  %4083 = vmatpush1.bf16.msra.mxu0 %v5638_v54  ;;  %v5717_v53 = vld [vmem:[#allocation11 + $0x2f0] ss:$28 sps:$4 sm:$0xff]   ;;  %v5714_v54 = vld [vmem:[#allocation11 + $0x128] ss:$28 sps:$4 sm:$0xff]  }
 0x451   :  { %4002 = vmatprep.subr.bf16.mxu1 %v5643_v55  ;;  %4084 = vmatprep.subr.bf16.mxu0 %v5646_v56  ;;  %v5718_v55 = vld [vmem:[#allocation11 + $0x130] ss:$28 sps:$4 sm:$0xff]   ;;  %v5721_v56 = vld [vmem:[#allocation11 + $0x164] ss:$28 sps:$4 sm:$0xff]  }
 0x454   :  { %4003 = vmatpush1.bf16.msra.mxu1 %v5641_v57  ;;  %4085 = vmatpush1.bf16.msra.mxu0 %v5644_v58  ;;  %v5722_v57 = vld [vmem:[#allocation11 + $0x328] ss:$28 sps:$4 sm:$0xff]   ;;  %v5719_v58 = vld [vmem:[#allocation11 + $0x160] ss:$28 sps:$4 sm:$0xff]  }
 0x455   :  { %4004 = vmatprep.subr.bf16.mxu1 %v5649_v59  ;;  %4086 = vmatprep.subr.bf16.mxu0 %v5652_v60  ;;  %v5723_v59 = vld [vmem:[#allocation11 + $0x168] ss:$28 sps:$4 sm:$0xff]   ;;  %v5726_v60 = vld [vmem:[#allocation11 + $0x19c] ss:$28 sps:$4 sm:$0xff]  }
 0x458   :  { %4005 = vmatpush1.bf16.msra.mxu1 %v5647_v61  ;;  %4087 = vmatpush1.bf16.msra.mxu0 %v5650_v62  ;;  %v5727_v61 = vld [vmem:[#allocation11 + $0x360] ss:$28 sps:$4 sm:$0xff]   ;;  %v5724_v62 = vld [vmem:[#allocation11 + $0x198] ss:$28 sps:$4 sm:$0xff]  }
 0x459   :  { %4006 = vmatprep.subr.bf16.mxu1 %v5655_v63  ;;  %4088 = vmatprep.subr.bf16.mxu0 %v5658_v0  ;;  %v5728_v63 = vld [vmem:[#allocation11 + $0x1a0] ss:$28 sps:$4 sm:$0xff]   ;;  %v5731_v0 = vld [vmem:[#allocation11 + $0x1d4] ss:$28 sps:$4 sm:$0xff]  }
 0x45c   :  { %4007 = vmatpush1.bf16.msra.mxu1 %v5653_v2  ;;  %4089 = vmatpush1.bf16.msra.mxu0 %v5656_v3  ;;  %v5729_v2 = vld [vmem:[#allocation11 + $0x1d0] ss:$28 sps:$4 sm:$0xff]  }
 0x45d   :  { %4008 = vmatprep.subr.bf16.mxu1 %v5661_v4  ;;  %4090 = vmatprep.subr.bf16.mxu0 %v5664_v5  ;;  %v5734_v3 = vld [vmem:[#allocation11 + $0x20c] ss:$28 sps:$4 sm:$0xff]   ;;  %v5737_v5 = vld [vmem:[#allocation11 + $0x244] ss:$28 sps:$4 sm:$0xff]  }
 0x45e   :  { %v5732_v4 = vld [vmem:[#allocation11 + $0x208] ss:$28 sps:$4 sm:$0xff]  }
 0x460   :  { %4009 = vmatpush1.bf16.msra.mxu1 %v5659_v7  ;;  %4091 = vmatpush1.bf16.msra.mxu0 %v5662_v8  ;;  %v5735_v7 = vld [vmem:[#allocation11 + $0x240] ss:$28 sps:$4 sm:$0xff]  }
 0x461   :  { %4010 = vmatprep.subr.bf16.mxu1 %v5667_v9  ;;  %4092 = vmatprep.subr.bf16.mxu0 %v5670_v10  ;;  %v5740_v8 = vld [vmem:[#allocation11 + $0x27c] ss:$28 sps:$4 sm:$0xff]   ;;  %v5743_v10 = vld [vmem:[#allocation11 + $0x2b4] ss:$28 sps:$4 sm:$0xff]  }
 0x462   :  { %v5738_v9 = vld [vmem:[#allocation11 + $0x278] ss:$28 sps:$4 sm:$0xff]  }
 0x464   :  { %4011 = vmatpush1.bf16.msra.mxu1 %v5665_v12  ;;  %4093 = vmatpush1.bf16.msra.mxu0 %v5668_v13  ;;  %v5741_v12 = vld [vmem:[#allocation11 + $0x2b0] ss:$28 sps:$4 sm:$0xff]  }
 0x465   :  { %4012 = vmatprep.subr.bf16.mxu1 %v5673_v14  ;;  %4094 = vmatprep.subr.bf16.mxu0 %v5676_v17  ;;  %v5746_v13 = vld [vmem:[#allocation11 + $0x2ec] ss:$28 sps:$4 sm:$0xff]   ;;  %v5749_v17 = vld [vmem:[#allocation11 + $0x324] ss:$28 sps:$4 sm:$0xff]  }
 0x466   :  { %v5744_v14 = vld [vmem:[#allocation11 + $0x2e8] ss:$28 sps:$4 sm:$0xff]  }
 0x468   :  { %4013 = vmatpush1.bf16.msra.mxu1 %v5671_v20  ;;  %4095 = vmatpush1.bf16.msra.mxu0 %v5674_v21  ;;  %v5747_v20 = vld [vmem:[#allocation11 + $0x320] ss:$28 sps:$4 sm:$0xff]  }
 0x469   :  { %4014 = vmatprep.subr.bf16.mxu1 %v5679_v11  ;;  %4096 = vmatprep.subr.bf16.mxu0 %v5682_v24  ;;  %v5752_v21 = vld [vmem:[#allocation11 + $0x35c] ss:$28 sps:$4 sm:$0xff]   ;;  %v5755_v24 = vld [vmem:[#allocation11 + $0x394] ss:$28 sps:$4 sm:$0xff]  }
 0x46a   :  { %v5750_v11 = vld [vmem:[#allocation11 + $0x358] ss:$28 sps:$4 sm:$0xff]  }
 0x46c   :  { %4015 = vmatpush1.bf16.msra.mxu1 %v5677_v25  ;;  %4097 = vmatpush1.bf16.msra.mxu0 %v5680_v27  ;;  %v5753_v25 = vld [vmem:[#allocation11 + $0x390] ss:$28 sps:$4 sm:$0xff]  }
 0x46d   :  { %4016 = vmatprep.subr.bf16.mxu1 %v5685_v28  ;;  %4098 = vmatprep.subr.bf16.mxu0 %v5688_v29  ;;  %v5758_v27 = vld [vmem:[#allocation11 + $0x3cc] ss:$28 sps:$4 sm:$0xff]   ;;  %v5761_v29 = vld [vmem:[#allocation11 + $0x404] ss:$28 sps:$4 sm:$0xff]  }
 0x46e   :  { %v5756_v28 = vld [vmem:[#allocation11 + $0x3c8] ss:$28 sps:$4 sm:$0xff]  }
 0x470   :  { %4017 = vmatpush1.bf16.msra.mxu1 %v5683_v30  ;;  %4099 = vmatpush1.bf16.msra.mxu0 %v5686_v31  ;;  %v5759_v30 = vld [vmem:[#allocation11 + $0x400] ss:$28 sps:$4 sm:$0xff]  }
 0x471   :  { %4109 = vmatprep.subr.bf16.mxu1 %v5691_v33  ;;  %4936 = vmatprep.subr.bf16.mxu0 %v5692_v34  ;;  %v5764_v31 = vld [vmem:[#allocation11 + $0x43c] ss:$28 sps:$4 sm:$0xff]   ;;  %v5767_v33 = vld [vmem:[#allocation11 + $0x474] ss:$28 sps:$4 sm:$0xff]  }
 0x472   :  { %v5765_v34 = vld [vmem:[#allocation11 + $0x470] ss:$28 sps:$4 sm:$0xff]  }
 0x473   :  { %4019 = vmatmul.mubr.bf16.vlgmr.msra.gmra.mrb[8].mxu1 %v6240_v36  ;;  %4101 = vmatmul.mubr.bf16.vlgmr.msra.gmra.mrb[12].mxu0 %v6240_v36 }
 0x474   :  { %4110 = vmatpush1.bf16.msra.mxu1 %v5689_v35  ;;  %4141 = vmatprep.mubr.bf16.mxu1 %v6227_v23  ;;  %v5770_v35 = vld [vmem:[#allocation11 + $0x4ac] ss:$28 sps:$4 sm:$0xff]  }
 0x475   :  { %4937 = vmatpush3.bf16.msra.mxu0 %v5693_v37  ;;  %4223 = vmatprep.mubr.bf16.mxu0 %v6227_v23  ;;  %v5712_v23 = vld [vmem:[#allocation11 + $0x2b8] ss:$28 sps:$4 sm:$0xff]   ;;  %v5773_v37 = vld [vmem:[#allocation11 + $0x4e4] ss:$28 sps:$4 sm:$0xff]  }
 0x476   :  { %4111 = vmatprep.subr.bf16.mxu1 %v5696_v38  ;;  %4938 = vmatprep.subr.bf16.mxu0 %v5697_v39  ;;  %v5771_v38 = vld [vmem:[#allocation11 + $0x4e0] ss:$28 sps:$4 sm:$0xff]  }
 0x477   :  { %v5776_v39 = vld [vmem:[#allocation11 + $0x51c] ss:$28 sps:$4 sm:$0xff]  }
 0x478   :  { %4112 = vmatpush1.bf16.msra.mxu1 %v5694_v6  ;;  %v5774_v6 = vld [vmem:[#allocation11 + $0x518] ss:$28 sps:$4 sm:$0xff]  }
 0x479   :  { %4939 = vmatpush3.bf16.msra.mxu0 %v5698_v40  ;;  %4113 = vmatprep.subr.bf16.mxu1 %v5701_v41  ;;  %v5779_v40 = vld [vmem:[#allocation11 + $0x554] ss:$28 sps:$4 sm:$0xff]  }
 0x47a   :  { %4940 = vmatprep.subr.bf16.mxu0 %v5702_v42  ;;  %v5777_v41 = vld [vmem:[#allocation11 + $0x550] ss:$28 sps:$4 sm:$0xff]  }
 0x47b   :  { %v5782_v42 = vld [vmem:[#allocation11 + $0x58c] ss:$28 sps:$4 sm:$0xff]  }
 0x47c   :  { %4114 = vmatpush1.bf16.msra.mxu1 %v5699_v43  ;;  %v5780_v43 = vld [vmem:[#allocation11 + $0x588] ss:$28 sps:$4 sm:$0xff]  }
 0x47d   :  { %4941 = vmatpush3.bf16.msra.mxu0 %v5703_v44  ;;  %4115 = vmatprep.subr.bf16.mxu1 %v5706_v45  ;;  %v5785_v44 = vld [vmem:[#allocation11 + $0x5c4] ss:$28 sps:$4 sm:$0xff]  }
 0x47e   :  { %4942 = vmatprep.subr.bf16.mxu0 %v5707_v46  ;;  %v5783_v45 = vld [vmem:[#allocation11 + $0x5c0] ss:$28 sps:$4 sm:$0xff]  }
 0x47f   :  { %v5788_v46 = vld [vmem:[#allocation11 + $0x5fc] ss:$28 sps:$4 sm:$0xff]  }
 0x480   :  { %4116 = vmatpush1.bf16.msra.mxu1 %v5704_v47  ;;  %v5786_v47 = vld [vmem:[#allocation11 + $0x5f8] ss:$28 sps:$4 sm:$0xff]  }
 0x481   :  { %4943 = vmatpush3.bf16.msra.mxu0 %v5708_v48  ;;  %4117 = vmatprep.subr.bf16.mxu1 %v5711_v49  ;;  %v5791_v48 = vld [vmem:[#allocation11 + $0x634] ss:$28 sps:$4 sm:$0xff]  }
 0x482   :  { %4944 = vmatprep.subr.bf16.mxu0 %v5712_v23  ;;  %v5789_v49 = vld [vmem:[#allocation11 + $0x630] ss:$28 sps:$4 sm:$0xff]  }
 0x483   :  { %v5794_v23 = vld [vmem:[#allocation11 + $0x66c] ss:$28 sps:$4 sm:$0xff]  }
 0x484   :  { %4118 = vmatpush1.bf16.msra.mxu1 %v5709_v50  ;;  %v5792_v50 = vld [vmem:[#allocation11 + $0x668] ss:$28 sps:$4 sm:$0xff]  }
 0x485   :  { %4945 = vmatpush3.bf16.msra.mxu0 %v5713_v51  ;;  %4119 = vmatprep.subr.bf16.mxu1 %v5716_v52  ;;  %v5797_v51 = vld [vmem:[#allocation11 + $0x6a4] ss:$28 sps:$4 sm:$0xff]  }
 0x486   :  { %4946 = vmatprep.subr.bf16.mxu0 %v5717_v53  ;;  %v5795_v52 = vld [vmem:[#allocation11 + $0x6a0] ss:$28 sps:$4 sm:$0xff]  }
 0x487   :  { %v5800_v53 = vld [vmem:[#allocation11 + $0x6dc] ss:$28 sps:$4 sm:$0xff]  }
 0x488   :  { %4120 = vmatpush1.bf16.msra.mxu1 %v5714_v54  ;;  %v5798_v54 = vld [vmem:[#allocation11 + $0x6d8] ss:$28 sps:$4 sm:$0xff]  }
 0x489   :  { %4947 = vmatpush3.bf16.msra.mxu0 %v5718_v55  ;;  %4121 = vmatprep.subr.bf16.mxu1 %v5721_v56  ;;  %v5801_v55 = vld [vmem:[#allocation11 + $0x558] ss:$28 sps:$4 sm:$0xff]  }
 0x48a   :  { %4948 = vmatprep.subr.bf16.mxu0 %v5722_v57  ;;  %v5802_v56 = vld [vmem:[#allocation11 + $0x398] ss:$28 sps:$4 sm:$0xff]   ;;  %v5803_v57 = vld [vmem:[#allocation11 + $0x590] ss:$28 sps:$4 sm:$0xff]  }
 0x48c   :  { %4122 = vmatpush1.bf16.msra.mxu1 %v5719_v58  ;;  %v5804_v58 = vld [vmem:[#allocation11 + $0x3d0] ss:$28 sps:$4 sm:$0xff]  }
 0x48d   :  { %4949 = vmatpush3.bf16.msra.mxu0 %v5723_v59  ;;  %4123 = vmatprep.subr.bf16.mxu1 %v5726_v60  ;;  %v5805_v59 = vld [vmem:[#allocation11 + $0x5c8] ss:$28 sps:$4 sm:$0xff]  }
 0x48e   :  { %4950 = vmatprep.subr.bf16.mxu0 %v5727_v61  ;;  %v5806_v60 = vld [vmem:[#allocation11 + $0x408] ss:$28 sps:$4 sm:$0xff]   ;;  %v5807_v61 = vld [vmem:[#allocation11 + $0x600] ss:$28 sps:$4 sm:$0xff]  }
 0x490   :  { %4124 = vmatpush1.bf16.msra.mxu1 %v5724_v62  ;;  %v5808_v62 = vld [vmem:[#allocation11 + $0x440] ss:$28 sps:$4 sm:$0xff]  }
 0x491   :  { %4951 = vmatpush3.bf16.msra.mxu0 %v5728_v63  ;;  %4125 = vmatprep.subr.bf16.mxu1 %v5731_v0  ;;  %v5809_v63 = vld [vmem:[#allocation11 + $0x638] ss:$28 sps:$4 sm:$0xff]  }
 0x492   :  { %v5810_v0 = vld [vmem:[#allocation11 + $0x478] ss:$28 sps:$4 sm:$0xff]  }
 0x494   :  { %4224 = vmatmul.mubr.bf16.vlgmr.msra.gmra.mrb[16].mxu0 %v6229_v26  ;;  %4126 = vmatpush1.bf16.msra.mxu1 %v5729_v2  ;;  %v5811_v2 = vld [vmem:[#allocation11 + $0x670] ss:$28 sps:$4 sm:$0xff]  }
 0x495   :  { %4127 = vmatprep.subr.bf16.mxu1 %v5734_v3  ;;  %v5812_v3 = vld [vmem:[#allocation11 + $0x4b0] ss:$28 sps:$4 sm:$0xff]  }
 0x498   :  { %4128 = vmatpush1.bf16.msra.mxu1 %v5732_v4  ;;  %v5813_v4 = vld [vmem:[#allocation11 + $0x6a8] ss:$28 sps:$4 sm:$0xff]  }
 0x499   :  { %4129 = vmatprep.subr.bf16.mxu1 %v5737_v5  ;;  %v5815_v5 = vld [vmem:[#allocation11 + $0x6e0] ss:$28 sps:$4 sm:$0xff]  }
 0x49c   :  { %4130 = vmatpush1.bf16.msra.mxu1 %v5735_v7  ;;  %v5816_v7 = vld [vmem:[#allocation11 + $0x520] ss:$28 sps:$4 sm:$0xff]  }
 0x49d   :  { %4131 = vmatprep.subr.bf16.mxu1 %v5740_v8  ;;  %v6255_v8 = vld [vmem:[%s6302_s9] sm:$0xff] }
 0x4a0   :  { %4132 = vmatpush1.bf16.msra.mxu1 %v5738_v9  ;;  %v2761_v9 = vrot.slane %v6255_v8, %v6185_v16 }
 0x4a1   :  { %4133 = vmatprep.subr.bf16.mxu1 %v5743_v10  ;;  %v2769_v10 = vrot.slane %v6255_v8, %v6207_v1 }
 0x4a4   :  { %4134 = vmatpush1.bf16.msra.mxu1 %v5741_v12  ;;  %v2765_v12 = vrot.slane %v6255_v8, %v6193_v18 }
 0x4a5   :  { %4135 = vmatprep.subr.bf16.mxu1 %v5746_v13  ;;  %v2773_v13 = vrot.slane %v6255_v8, %v6196_v19 }
 0x4a8   :  { %4136 = vmatpush1.bf16.msra.mxu1 %v5744_v14 }
 0x4a9   :  { %4137 = vmatprep.subr.bf16.mxu1 %v5749_v17 }
 0x4ac   :  { %4138 = vmatpush1.bf16.msra.mxu1 %v5747_v20 }
 0x4ad   :  { %4139 = vmatprep.subr.bf16.mxu1 %v5752_v21 }
 0x4b0   :  { %4140 = vmatpush1.bf16.msra.mxu1 %v5750_v11 }
 0x4b1   :  { %4150 = vmatprep.subr.bf16.mxu1 %v5755_v24 }
 0x4b3   :  { %4142 = vmatmul.mubr.bf16.vlgmr.msra.gmra.mrb[12].mxu1 %v6229_v26  ;;  %v5768_v26 = vld [vmem:[#allocation11 + $0x4a8] ss:$28 sps:$4 sm:$0xff]  }
 0x4b4   :  { %4151 = vmatpush1.bf16.msra.mxu1 %v5753_v25  ;;  %4182 = vmatprep.mubr.bf16.mxu1 %v6233_v22 }
 0x4b5   :  { %4152 = vmatprep.subr.bf16.mxu1 %v5758_v27 }
 0x4b8   :  { %4153 = vmatpush1.bf16.msra.mxu1 %v5756_v28 }
 0x4b9   :  { %4154 = vmatprep.subr.bf16.mxu1 %v5761_v29 }
 0x4bc   :  { %4155 = vmatpush1.bf16.msra.mxu1 %v5759_v30 }
 0x4bd   :  { %4156 = vmatprep.subr.bf16.mxu1 %v5764_v31 }
 0x4c0   :  { %4157 = vmatpush1.bf16.msra.mxu1 %v5762_v32 }
 0x4c1   :  { %4158 = vmatprep.subr.bf16.mxu1 %v5767_v33 }
 0x4c4   :  { %4159 = vmatpush1.bf16.msra.mxu1 %v5765_v34 }
 0x4c5   :  { %4160 = vmatprep.subr.bf16.mxu1 %v5770_v35 }
 0x4c8   :  { %4161 = vmatpush1.bf16.msra.mxu1 %v5768_v26 }
 0x4c9   :  { %4162 = vmatprep.subr.bf16.mxu1 %v5773_v37 }
 0x4cc   :  { %4163 = vmatpush1.bf16.msra.mxu1 %v5771_v38 }
 0x4cd   :  { %4164 = vmatprep.subr.bf16.mxu1 %v5776_v39 }
 0x4d0   :  { %4165 = vmatpush1.bf16.msra.mxu1 %v5774_v6 }
 0x4d1   :  { %4166 = vmatprep.subr.bf16.mxu1 %v5779_v40 }
 0x4d4   :  { %4167 = vmatpush1.bf16.msra.mxu1 %v5777_v41 }
 0x4d5   :  { %4168 = vmatprep.subr.bf16.mxu1 %v5782_v42 }
 0x4d8   :  { %4169 = vmatpush1.bf16.msra.mxu1 %v5780_v43 }
 0x4d9   :  { %4170 = vmatprep.subr.bf16.mxu1 %v5785_v44 }
 0x4dc   :  { %4171 = vmatpush1.bf16.msra.mxu1 %v5783_v45 }
 0x4dd   :  { %4172 = vmatprep.subr.bf16.mxu1 %v5788_v46  ;;  %v5849_v46 = vld [vmem:[#allocation2] sm:$0xff] }
 0x4e0   :  { %4173 = vmatpush1.bf16.msra.mxu1 %v5786_v47  ;;  %v4320_v47 = vunpack.c.l.bf16 %v5849_v46 }
 0x4e1   :  { %4174 = vmatprep.subr.bf16.mxu1 %v5791_v48  ;;  %v4321_v48 = vunpack.c.h.bf16 %v5849_v46 }
 0x4e4   :  { %4175 = vmatpush1.bf16.msra.mxu1 %v5789_v49 }
 0x4e5   :  { %4176 = vmatprep.subr.bf16.mxu1 %v5794_v23 }
 0x4e8   :  { %4177 = vmatpush1.bf16.msra.mxu1 %v5792_v50  ;;  %v5850_v50 = vld [vmem:[#allocation2 + $0x8] sm:$0xff] }
 0x4e9   :  { %4178 = vmatprep.subr.bf16.mxu1 %v5797_v51  ;;  %v4322_v51 = vunpack.c.l.bf16 %v5850_v50 }
 0x4ec   :  { %4179 = vmatpush1.bf16.msra.mxu1 %v5795_v52 }
 0x4ed   :  { %4180 = vmatprep.subr.bf16.mxu1 %v5800_v53 }
 0x4f0   :  { %4181 = vmatpush1.bf16.msra.mxu1 %v5798_v54  ;;  %v4323_v54 = vunpack.c.h.bf16 %v5850_v50 }
 0x4f1   :  { %4958 = vmatprep.subr.bf16.mxu1 %v5801_v55 }
 0x4f3   :  { %4183 = vmatmul.mubr.bf16.vlgmr.msra.gmra.mrb[12].mxu1 %v6240_v36 }
 0x4f4   :  { %4959 = vmatpush3.bf16.msra.mxu1 %v5802_v56  ;;  %4263 = vmatprep.mubr.bf16.mxu1 %v6233_v22  ;;  %v5814_v22 = vld [vmem:[#allocation11 + $0x4e8] ss:$28 sps:$4 sm:$0xff]  }
 0x4f5   :  { %4960 = vmatprep.subr.bf16.mxu1 %v5803_v57 }
 0x4f8   :  { %4961 = vmatpush3.bf16.msra.mxu1 %v5804_v58 }
 0x4f9   :  { %4962 = vmatprep.subr.bf16.mxu1 %v5805_v59 }
 0x4fc   :  { %4963 = vmatpush3.bf16.msra.mxu1 %v5806_v60 }
 0x4fd   :  { %4964 = vmatprep.subr.bf16.mxu1 %v5807_v61 }
 0x500   :  { %4965 = vmatpush3.bf16.msra.mxu1 %v5808_v62 }
 0x501   :  { %4966 = vmatprep.subr.bf16.mxu1 %v5809_v63 }
 0x504   :  { %4967 = vmatpush3.bf16.msra.mxu1 %v5810_v0 }
 0x505   :  { %4968 = vmatprep.subr.bf16.mxu1 %v5811_v2 }
 0x508   :  { %4969 = vmatpush3.bf16.msra.mxu1 %v5812_v3 }
 0x509   :  { %4970 = vmatprep.subr.bf16.mxu1 %v5813_v4 }
 0x50c   :  { %4971 = vmatpush3.bf16.msra.mxu1 %v5814_v22 }
 0x50d   :  { %4972 = vmatprep.subr.bf16.mxu1 %v5815_v5 }
 0x510   :  { %4973 = vmatpush3.bf16.msra.mxu1 %v5816_v7 }
 0x513   :  { %4264 = vmatmul.mubr.bf16.vlgmr.msra.gmra.mrb[16].mxu1 %v6240_v36 }
 0x546   :  { %v4020_v14 = vpop.f32.mrb[8].mxu1  ;;  %v4102_v17 = vpop.f32.mrb[12].mxu0 }
 0x547   :  { %v4986_v36 = vadd.f32 %v4020_v14, %v2761_v9  ;;  %v6265_v20 = vadd.f32 %v4102_v17, %v2769_v10  ;;  %v4022_v21 = vpop.f32.mrb[9].mxu1  ;;  %v4104_v11 = vpop.f32.mrb[13].mxu0 }
 0x548   :  { %v4987_v24 = vadd.f32 %v4022_v21, %v2765_v12  ;;  %v6267_v25 = vadd.f32 %v4104_v11, %v2773_v13  ;;  %v4024_v16 = vpop.f32.mrb[10].mxu1  ;;  %v4106_v27 = vpop.f32.mrb[14].mxu0 }
 0x549   :  { %v4271_v28 = vand.u32 2147483647, %v4986_v36  ;;  %v4273_v1 = vand.u32 2147483647, %v6265_v20  ;;  %v4025_v29 = vpop.f32.mrb[11].mxu1  ;;  %v4107_v30 = vpop.f32.mrb[15].mxu0  ;;  %v4334_v23 = vmul.f32 %v4986_v36, %v4320_v47  ;;  %v4336_v60 = vmul.f32 %v6265_v20, %v4322_v51 }
 0x54a   :  { %v4272_v18 = vand.u32 2147483647, %v4987_v24  ;;  %v4274_v33 = vand.u32 2147483647, %v6267_v25  ;;  %v4327_v49 = vmax.f32 %v4986_v36, 0.0  ;;  %v4328_v52 = vmax.f32 %v4987_v24, 0.0 }
 0x54b   :  { %v4278_v31 = vsub.f32 0.0, %v4271_v28  ;;  %v4280_v19 = vsub.f32 0.0, %v4273_v1  ;;  %v4335_v53 = vmul.f32 %v4987_v24, %v4321_v48  ;;  %v4329_v59 = vmax.f32 %v6265_v20, 0.0 }
 0x54c   :  { %v4279_v32 = vsub.f32 0.0, %v4272_v18  ;;  %v4281_v37 = vsub.f32 0.0, %v4274_v33  ;;  %v4341_v58 = vsub.f32 %v4327_v49, %v4334_v23  ;;  %v4330_v0 = vmax.f32 %v6267_v25, 0.0 }
 0x54d   :  { %v4285_v34 = vmul.f32 1.442695, %v4278_v31  ;;  %v4289_v35 = vmul.f32 1.442695, %v4280_v19  ;;  %v4342_v63 = vsub.f32 %v4328_v52, %v4335_v53  ;;  %v4337_v2 = vmul.f32 %v6267_v25, %v4323_v54 }
 0x54e   :  { %v4287_v26 = vmul.f32 1.442695, %v4279_v32  ;;  %v4291_v38 = vmul.f32 1.442695, %v4281_v37  ;;  %v4343_v13 = vsub.f32 %v4329_v59, %v4336_v60  ;;  %v2776_v27 = vsub.s32 4, %v6182_v15 }
 0x54f   :  { %5821 = vpow2.f32 %v4285_v34  ;;  %v4344_v21 = vsub.f32 %v4330_v0, %v4337_v2  ;;  %v2780_v25 = vsub.s32 5, %v6182_v15 }
 0x550   :  { %5823 = vpow2.f32 %v4289_v35  ;;  %v2777_v28 = vrot.slane %v6255_v8, %v2776_v27 }
 0x551   :  { %5825 = vpow2.f32 %v4287_v26  ;;  %v2781_v1 = vrot.slane %v6255_v8, %v2780_v25 }
 0x552   :  { %5827 = vpow2.f32 %v4291_v38 }
 0x559   :  { %v5822_v39 = vpop.eup %5821 }
 0x55a   :  { %v5824_v6 = vpop.eup %5823  ;;  %v4299_v40 = vadd.f32 1.0, %v5822_v39 }
 0x55b   :  { %v5826_v41 = vpop.eup %5825  ;;  %v4301_v42 = vadd.f32 1.0, %v5824_v6 }
 0x55c   :  { %v5828_v43 = vpop.eup %5827  ;;  %5829 = vlog2.f32 %v4299_v40  ;;  %v4300_v44 = vadd.f32 1.0, %v5826_v41 }
 0x55d   :  { %5831 = vlog2.f32 %v4301_v42  ;;  %v4302_v45 = vadd.f32 1.0, %v5828_v43  ;;  %v5851_v42 = vld [vmem:[#allocation2 + $0x10] sm:$0xff] }
 0x55e   :  { %5833 = vlog2.f32 %v4300_v44  ;;  %v4324_v43 = vunpack.c.l.bf16 %v5851_v42  ;;  %v2784_v44 = vsub.s32 6, %v6182_v15 }
 0x55f   :  { %5835 = vlog2.f32 %v4302_v45  ;;  %v4325_v45 = vunpack.c.h.bf16 %v5851_v42 }
 0x560   :  { %v2785_v48 = vrot.slane %v6255_v8, %v2784_v44 }
 0x566   :  { %v5830_v55 = vpop.eup %5829 }
 0x567   :  { %v5832_v56 = vpop.eup %5831  ;;  %v4307_v57 = vmul.f32 0.6931472, %v5830_v55  ;;  %v4952_v61 = vpop.f32.mrb[16].mxu0 }
 0x568   :  { %v5834_v62 = vpop.eup %5833  ;;  %v4953_v3 = vpop.f32.mrb[17].mxu0  ;;  %v4311_v5 = vmul.f32 0.6931472, %v5832_v56 }
 0x569   :  { %v5836_v4 = vpop.eup %5835  ;;  %v4348_v22 = vadd.f32 %v4341_v58, %v4307_v57  ;;  %v4309_v7 = vmul.f32 0.6931472, %v5834_v62  ;;  %v4954_v9 = vadd.f32 %v4953_v3, %v4952_v61  ;;  %v4955_v10 = vpop.f32.mrb[18].mxu0 }
 0x56a   :  { %v4956_v12 = vpop.f32.mrb[19].mxu0  ;;  %v4313_v17 = vmul.f32 0.6931472, %v5836_v4  ;;  %v4350_v36 = vadd.f32 %v4343_v13, %v4311_v5 }
 0x56b   :  { %v4349_v14 = vadd.f32 %v4342_v63, %v4309_v7  ;;  %v4226_v56 = vadd.f32 %v4954_v9, %v2785_v48  ;;  %v5852_v7 = vld [vmem:[#allocation2 + $0x18] sm:$0xf] }
 0x56c   :  { %v4351_v11 = vadd.f32 %v4344_v21, %v4313_v17  ;;  %v4326_v10 = vunpack.c.l.bf16 %v5852_v7  ;;  %v4372_v21 = vpop.xlane.xlu0 %4371 }
 0x56d   :  { %v4355_v20 = vadd.f32 %v4349_v14, %v4348_v22 }
 0x56f   :  { %v4356_v24 = vadd.f32 %v4355_v20, %v4350_v36 }
 0x571   :  { %v4357_v16 = vadd.f32 %v4356_v24, %v4351_v11  ;;  %v4373_v11 = vmul.f32 -0.5, %v4372_v21 }
 0x5c6   :  { %v4184_v29 = vpop.f32.mrb[12].mxu1 }
 0x5c7   :  { %v4990_v18 = vadd.f32 %v4184_v29, %v2777_v28  ;;  %v4186_v30 = vpop.f32.mrb[13].mxu1 }
 0x5c8   :  { %v4991_v31 = vadd.f32 %v4186_v30, %v2781_v1  ;;  %v4188_v19 = vpop.f32.mrb[14].mxu1 }
 0x5c9   :  { %v4275_v32 = vand.u32 2147483647, %v4990_v18  ;;  %v4189_v33 = vpop.f32.mrb[15].mxu1  ;;  %v4331_v46 = vmax.f32 %v4990_v18, 0.0  ;;  %v4338_v47 = vmul.f32 %v4990_v18, %v4324_v43 }
 0x5ca   :  { %v4276_v34 = vand.u32 2147483647, %v4991_v31  ;;  %v4332_v49 = vmax.f32 %v4991_v31, 0.0  ;;  %v4339_v23 = vmul.f32 %v4991_v31, %v4325_v45 }
 0x5cb   :  { %v4282_v35 = vsub.f32 0.0, %v4275_v32  ;;  %v4345_v53 = vsub.f32 %v4331_v46, %v4338_v47 }
 0x5cc   :  { %v4283_v26 = vsub.f32 0.0, %v4276_v34  ;;  %v4346_v57 = vsub.f32 %v4332_v49, %v4339_v23 }
 0x5cd   :  { %v4293_v37 = vmul.f32 1.442695, %v4282_v35 }
 0x5ce   :  { %v4295_v38 = vmul.f32 1.442695, %v4283_v26 }
 0x5cf   :  { %5837 = vpow2.f32 %v4293_v37 }
 0x5d0   :  { %5839 = vpow2.f32 %v4295_v38 }
 0x5d9   :  { %v5838_v39 = vpop.eup %5837 }
 0x5da   :  { %v5840_v6 = vpop.eup %5839  ;;  %v4303_v40 = vadd.f32 1.0, %v5838_v39 }
 0x5db   :  { %v4304_v41 = vadd.f32 1.0, %v5840_v6 }
 0x5dc   :  { %5841 = vlog2.f32 %v4303_v40 }
 0x5dd   :  { %5843 = vlog2.f32 %v4304_v41 }
 0x5e6   :  { %v5842_v50 = vpop.eup %5841  ;;  %v4974_v51 = vpop.f32.mrb[16].mxu1 }
 0x5e7   :  { %v5844_v52 = vpop.eup %5843  ;;  %v4975_v54 = vpop.f32.mrb[17].mxu1  ;;  %v4315_v55 = vmul.f32 0.6931472, %v5842_v50 }
 0x5e8   :  { %v4976_v58 = vadd.f32 %v4975_v54, %v4974_v51  ;;  %v4977_v59 = vpop.f32.mrb[18].mxu1  ;;  %v4317_v60 = vmul.f32 0.6931472, %v5844_v52 }
 0x5e9   :  { %v4978_v61 = vpop.f32.mrb[19].mxu1  ;;  %v4352_v15 = vadd.f32 %v4345_v53, %v4315_v55 }
 0x5ea   :  { %v4266_v62 = vadd.f32 %v4976_v58, %v4226_v56  ;;  %v4353_v63 = vadd.f32 %v4346_v57, %v4317_v60 }
 0x5eb   :  { %v4358_v0 = vadd.f32 %v4357_v16, %v4352_v15 }
 0x5ec   :  { %v4277_v2 = vand.u32 2147483647, %v4266_v62  ;;  %v4333_v9 = vmax.f32 %v4266_v62, 0.0  ;;  %v4340_v12 = vmul.f32 %v4326_v10, %v4266_v62 }
 0x5ed   :  { %v4359_v8 = vadd.f32 %v4358_v0, %v4353_v63 }
 0x5ee   :  { %v4284_v3 = vsub.f32 0.0, %v4277_v2  ;;  %v4347_v17 = vsub.f32 %v4333_v9, %v4340_v12 }
 0x5f0   :  { %v4297_v4 = vmul.f32 1.442695, %v4284_v3 }
 0x5f2   :  { %5845 = vpow2.f32 %v4297_v4 }
 0x5fc   :  { %v5846_v22 = vpop.eup %5845 }
 0x5fd   :  { %v4305_v5 = vadd.f32 1.0, %v5846_v22 }
 0x5ff   :  { %5847 = vlog2.f32 %v4305_v5 }
 0x609   :  { %v5848_v13 = vpop.eup %5847 }
 0x60a   :  { %v4319_v14 = vmul.f32 0.6931472, %v5848_v13 }
 0x60c   :  { %v4354_v36 = vadd.f32 %v4347_v17, %v4319_v14 }
 0x60e   :  { %v4360_v20 = vadd.f32 %v4359_v8, %v4354_v36 }
 0x610   :  { %4361 = vadd.xlane.f32.xlu0 %v4360_v20 }
 0x69d   :  { %v4362_v24 = vpop.xlane.xlu0 %4361 }
 0x69e   :  { %v4374_v16 = vadd.f32 %v4373_v11, %v4362_v24 }
 0x6a0   :  { %v4376_v27 = vsel %vm4375_vm4, %v4374_v16, 0.0 }
 0x6a1   :  { %4377 = vadd.xlane.f32.xlu1 %v4376_v27 }
 0x72e   :  { %v4378_v25 = vpop.xlane.xlu1 %4377 }
 0x72f   :  { %v4379_v28 = vrot.slane %v4378_v25, 4 }
 0x731   :  { %v4380_v1 = vadd.f32 %v4379_v28, %v4378_v25 }
 0x733   :  { %v4381_v29 = vrot.slane %v4380_v1, 2 }
 0x735   :  { %v4382_v18 = vadd.f32 %v4381_v29, %v4380_v1 }
 0x737   :  { %v4383_v30 = vrot.slane %v4382_v18, 1 }
 0x739   :  { %v4384_v31 = vadd.f32 %v4383_v30, %v4382_v18 }
 0x73b   :  { %5032 = vpush %v4384_v31 }
 0x76c   :  { %s5033_s9 = spop %5032 }
 0x76d   :  { %4387 = sst [smem:[#allocation13]] %s5033_s9 }
 0x76e   :  { %5994 = shalt.err (!%p5991_p8)
}
 0x76f   :  { %s6018_s22 = smov [#allocation13]  }
 0x770   :  { %4395 = dma.smem_to_hbm %s6018_s22, 16, %s6303_s10, [#allocation4]  }
 0x771   :  { %6003 = dma.done.wait [#allocation4], 16  }
 0x772   :  { %6004 = vsyncadd [#allocation4], 4294967280 }
 0x773   :  { %4399 = sfence }
 0x774   :  { %4400 = vsyncpa [#allocation3], 1 }
 0x775   :  { %4401 = vsyncpa [#allocation6], 1 }
 0x776   :  { %4402 = vsyncpa [#allocation9], 1 }
 0x777   :  { %4403 = vsyncpa [#allocation12], 1 }
 0x778   :  { %4404 = vsyncpa [#allocation4], 1 }

</bundles_post_ra>
